<compile_context>
chip_gen: v7x
topology: tpu7x:2x2x1
jax: 0.10.0
libtpu: 0.0.40
codegen_flags: <defaults>
</compile_context>

<pallas_src>
import functools

import jax
import jax.numpy as jnp
from jax.experimental import pallas as pl
from jax.experimental.pallas import tpu as pltpu

_K = 5  # LeNet5 convolution kernel size


def _round_up(x, m):
    return (x + m - 1) // m * m


# ----------------------- one-time parameter preparation -----------------------

def _conv_lane_mats(w, win):
    """(Cout,Cin,K,K) conv weight -> (K, Cin*win, Cout*wout) lane matmul mats.

    B[ki, ci*win + wi, co*wout + ow] = w[co, ci, ki, wi - ow]  (0 <= wi-ow < K)
    so that conv_out[h, co*wout + ow] = sum_ki (x[h + ki, :] @ B[ki])[co*wout + ow]
    for activations laid out as rows = image row h, lanes = (channel, width).
    """
    cout, cin, k, _ = w.shape
    wout = win - k + 1
    wi = jnp.arange(win)
    ow = jnp.arange(wout)
    kj = jnp.arange(k)
    sel = (wi[None, :, None] == (ow[None, None, :] + kj[:, None, None]))
    sel = sel.astype(jnp.float32)                              # (K, win, wout)
    b = jnp.einsum("oiaj,jwv->aiwov", w.astype(jnp.float32), sel)
    return b.reshape(k, cin * win, cout * wout)


def _pool_lane_mat(channels, win):
    """Block-diagonal (C*win, C*(win//2)) matrix summing lane pairs per channel."""
    wout = win // 2
    w = jnp.arange(win)
    p = jnp.arange(wout)
    pw = ((w[:, None] == 2 * p[None, :]) |
          (w[:, None] == 2 * p[None, :] + 1)).astype(jnp.float32)
    return jnp.kron(jnp.eye(channels, dtype=jnp.float32), pw)


def _conv_bias_lanes(b, wout):
    return jnp.repeat(b.astype(jnp.float32), wout)[None, :]


def prepare_lenet5_params(params, image_hw=32, num_classes=0,
                          matmul_dtype=jnp.bfloat16):
    """Fold PyTorch-layout params into lane-dense matmul operands (done once).

    Matmul operands are stored in bf16 (MXU native); biases stay f32.  The
    final layer (fc2, or `out` when num_classes != 0) is zero-padded to a
    multiple of 128 lanes so the kernel's output store is lane-dense.
    """
    w0 = image_hw
    c1s = w0 - _K + 1            # 28
    p1s = c1s // 2               # 14
    c2s = p1s - _K + 1           # 10
    p2s = c2s // 2               # 5
    c3s = p2s - _K + 1           # 1
    assert c3s == 1, "LeNet5 requires 32x32 inputs"
    ch1 = params["conv1_w"].shape[0]
    ch2 = params["conv2_w"].shape[0]
    md = matmul_dtype
    prep = {
        "c1m": _conv_lane_mats(params["conv1_w"], w0).astype(md),   # (5, 32, 168)
        "c1b": _conv_bias_lanes(params["conv1_b"], c1s),            # (1, 168) f32
        "p1": _pool_lane_mat(ch1, c1s).astype(md),                  # (168, 84)
        "c2m": _conv_lane_mats(params["conv2_w"], p1s).astype(md),  # (5, 84, 160)
        "c2b": _conv_bias_lanes(params["conv2_b"], c2s),            # (1, 160) f32
        "p2": _pool_lane_mat(ch2, c2s).astype(md),                  # (160, 80)
        "c3m": _conv_lane_mats(params["conv3_w"], p2s).astype(md),  # (5, 80, 120)
        "c3b": _conv_bias_lanes(params["conv3_b"], c3s),            # (1, 120) f32
        "fc1w": params["fc1_w"].T.astype(md),                       # (120, 84)
        "fc1b": params["fc1_b"][None, :].astype(jnp.float32),
    }
    fc2w = params["fc2_w"].T.astype(jnp.float32)                    # (84, 10)
    fc2b = params["fc2_b"][None, :].astype(jnp.float32)
    if num_classes:
        prep["fc2w"] = fc2w.astype(md)
        prep["fc2b"] = fc2b
        outw = params["out_w"].T.astype(jnp.float32)                # (10, nc)
        outb = params["out_b"][None, :].astype(jnp.float32)
        pad = _round_up(num_classes, 128) - num_classes
        prep["outw"] = jnp.pad(outw, ((0, 0), (0, pad))).astype(md)
        prep["outb"] = jnp.pad(outb, ((0, 0), (0, pad)))
    else:
        pad = _round_up(fc2w.shape[1], 128) - fc2w.shape[1]
        prep["fc2w"] = jnp.pad(fc2w, ((0, 0), (0, pad))).astype(md) # (84, 128)
        prep["fc2b"] = jnp.pad(fc2b, ((0, 0), (0, pad)))            # (1, 128)
    return prep


# --------------------------------- kernel -------------------------------------

def _lenet5_kernel(x_ref, c1m_ref, c1b_ref, p1_ref, c2m_ref, c2b_ref, p2_ref,
                   c3m_ref, c3b_ref, fc1w_ref, fc1b_ref, fc2w_ref, fc2b_ref,
                   *rest):
    """Full LeNet5 forward for S samples; everything resident in VMEM.

    Activation layout: rows = (image_row major, sample minor), lanes =
    (channel, width).  Row windows/pairs are aligned sublane-block slices
    (offsets are multiples of S, S % 8 == 0), so only valid rows are computed.
    """
    if len(rest) == 3:
        outw_ref, outb_ref, o_ref = rest
    else:
        outw_ref = outb_ref = None
        (o_ref,) = rest

    f32 = jnp.float32
    mm = c1m_ref.dtype                      # matmul operand dtype (bf16)
    h_in, s, w_in = x_ref.shape             # (32, S, 32)

    def conv_tanh(x2, h, m_ref, b_ref):
        """x2: (h*S, K_lanes) f32 -> (tanh(conv + b): ((h-4)*S, N), h-4)."""
        k = m_ref.shape[0]
        h_out = h - (k - 1)
        xb = x2.astype(mm)
        acc = jnp.dot(xb[0:h_out * s, :], m_ref[0], preferred_element_type=f32)
        for ki in range(1, k):
            acc = acc + jnp.dot(xb[ki * s:(ki + h_out) * s, :], m_ref[ki],
                                preferred_element_type=f32)
        return jnp.tanh(acc + b_ref[...]), h_out

    def avgpool(y2, h, p_ref):
        """AvgPool2d(2): add adjacent-row blocks, then lane-pool matmul, *0.25."""
        h_out = h // 2
        c = y2.shape[1]
        y3 = y2.reshape(h_out, 2 * s, c)
        pair = (y3[:, :s, :] + y3[:, s:, :]).reshape(h_out * s, c)
        out = jnp.dot(pair.astype(mm), p_ref[...], preferred_element_type=f32)
        return out * 0.25, h_out

    x = x_ref[...].reshape(h_in * s, w_in)           # (32*S, 32) f32
    y, h = conv_tanh(x, h_in, c1m_ref, c1b_ref)      # (28*S, 168)
    y, h = avgpool(y, h, p1_ref)                     # (14*S,  84)
    y, h = conv_tanh(y, h, c2m_ref, c2b_ref)         # (10*S, 160)
    y, h = avgpool(y, h, p2_ref)                     # ( 5*S,  80)
    y, h = conv_tanh(y, h, c3m_ref, c3b_ref)         # (   S, 120) == flatten

    hid = jnp.tanh(jnp.dot(y.astype(mm), fc1w_ref[...],
                           preferred_element_type=f32) + fc1b_ref[...])
    out = jnp.dot(hid.astype(mm), fc2w_ref[...],
                  preferred_element_type=f32) + fc2b_ref[...]
    if outw_ref is not None:
        out = jnp.dot(out.astype(mm), outw_ref[...],
                      preferred_element_type=f32) + outb_ref[...]
    o_ref[...] = out.astype(o_ref.dtype)             # dense (S, 128k) store


# -------------------------------- wrapper --------------------------------------

@functools.partial(jax.jit, static_argnames=("num_classes", "block_batch"))
def lenet5_forward(x, prep, num_classes=0, block_batch=128):
    """x: (N, 1, 32, 32) float32 NCHW -> (N, 10) (or (N, num_classes))."""
    n, c, hh, ww = x.shape
    assert hh == 32 and ww == 32 and c == 1, "LeNet5 requires (N,1,32,32) inputs"

    # Samples per grid step: multiple of 8 (sublane), capped by the batch.
    s = min(_round_up(block_batch, 8), _round_up(n, 8))
    n_pad = _round_up(n, s)
    if n_pad != n:
        x = jnp.pad(x, ((0, n_pad - n), (0, 0), (0, 0), (0, 0)))
    # rows = image row (leading), sublanes = sample, lanes = (channel, width)
    x3d = x.transpose(2, 0, 1, 3).reshape(hh, n_pad, c * ww)

    args = [x3d, prep["c1m"], prep["c1b"], prep["p1"],
            prep["c2m"], prep["c2b"], prep["p2"],
            prep["c3m"], prep["c3b"],
            prep["fc1w"], prep["fc1b"], prep["fc2w"], prep["fc2b"]]
    if num_classes:
        args += [prep["outw"], prep["outb"]]
        out_dim, out_pad = num_classes, prep["outw"].shape[1]
    else:
        out_dim, out_pad = 10, prep["fc2w"].shape[1]

    in_specs = [pl.BlockSpec((hh, s, c * ww), lambda i: (0, i, 0))]
    for a in args[1:]:
        in_specs.append(pl.BlockSpec(a.shape, lambda i, _nd=a.ndim: (0,) * _nd))
    out_specs = pl.BlockSpec((s, out_pad), lambda i: (i, 0))

    # Advisory cost estimate for XLA's scheduler (whole call).
    hs = (28, 14, 10, 5, 1)   # valid rows after conv1, pool1, conv2, pool2, conv3
    flops = 2 * n_pad * (
        hs[0] * prep["c1m"].size + hs[1] * prep["p1"].size
        + hs[2] * prep["c2m"].size + hs[3] * prep["p2"].size
        + hs[4] * prep["c3m"].size
        + prep["fc1w"].size + prep["fc2w"].size
        + (prep["outw"].size if num_classes else 0))
    transcendentals = n_pad * (hs[0] * prep["c1b"].shape[1]
                               + hs[2] * prep["c2b"].shape[1]
                               + hs[4] * prep["c3b"].shape[1]
                               + prep["fc1b"].shape[1])
    bytes_accessed = (int(x3d.size) * x3d.dtype.itemsize
                      + sum(int(a.size) * a.dtype.itemsize for a in args[1:])
                      + n_pad * out_pad * 4)

    out = pl.pallas_call(
        _lenet5_kernel,
        out_shape=jax.ShapeDtypeStruct((n_pad, out_pad), jnp.float32),
        grid=(n_pad // s,),
        in_specs=in_specs,
        out_specs=out_specs,
        compiler_params=pltpu.CompilerParams(
            dimension_semantics=("parallel",),
            vmem_limit_bytes=32 * 1024 * 1024),
        cost_estimate=pl.CostEstimate(
            flops=int(flops), transcendentals=int(transcendentals),
            bytes_accessed=int(bytes_accessed)),
    )(*args)
    return out[:n, :out_dim]


# ------------------------------ params & reference -----------------------------

def init_lenet5_params(key, num_classes=0):
    """Deterministic synthetic parameters matching PyTorch layer shapes."""
    def uni(key, shape, fan_in):
        bound = 1.0 / jnp.sqrt(float(fan_in))
        return jax.random.uniform(key, shape, jnp.float32, -bound, bound)

    keys = jax.random.split(key, 12)
    p = {
        "conv1_w": uni(keys[0], (6, 1, 5, 5), 1 * 5 * 5),
        "conv1_b": uni(keys[1], (6,), 1 * 5 * 5),
        "conv2_w": uni(keys[2], (16, 6, 5, 5), 6 * 5 * 5),
        "conv2_b": uni(keys[3], (16,), 6 * 5 * 5),
        "conv3_w": uni(keys[4], (120, 16, 5, 5), 16 * 5 * 5),
        "conv3_b": uni(keys[5], (120,), 16 * 5 * 5),
        "fc1_w": uni(keys[6], (84, 120), 120),   # PyTorch Linear: (out, in)
        "fc1_b": uni(keys[7], (84,), 120),
        "fc2_w": uni(keys[8], (10, 84), 84),
        "fc2_b": uni(keys[9], (10,), 84),
    }
    if num_classes != 0:
        p["out_w"] = uni(keys[10], (num_classes, 10), 10)
        p["out_b"] = uni(keys[11], (num_classes,), 10)
    return p


def _reference_forward(x, params, num_classes=0):
    """Pure-XLA reference of the PyTorch LeNet5 forward (for validation)."""
    hi = jax.lax.Precision.HIGHEST

    def conv_tanh(x, w, b):
        y = jax.lax.conv_general_dilated(
            x, w, window_strides=(1, 1), padding="VALID",
            dimension_numbers=("NCHW", "OIHW", "NCHW"), precision=hi)
        return jnp.tanh(y + b[None, :, None, None])

    def avgpool2(x):
        n, c, h, w = x.shape
        return x.reshape(n, c, h // 2, 2, w // 2, 2).mean(axis=(3, 5))

    x = avgpool2(conv_tanh(x, params["conv1_w"], params["conv1_b"]))
    x = avgpool2(conv_tanh(x, params["conv2_w"], params["conv2_b"]))
    x = conv_tanh(x, params["conv3_w"], params["conv3_b"])
    x = x.reshape(x.shape[0], -1)
    x = jnp.tanh(jnp.dot(x, params["fc1_w"].T, precision=hi) + params["fc1_b"])
    x = jnp.dot(x, params["fc2_w"].T, precision=hi) + params["fc2_b"]
    if num_classes:
        x = jnp.dot(x, params["out_w"].T, precision=hi) + params["out_b"]
    return x


# ---------------------------------- main ---------------------------------------

if __name__ == "__main__":
    key = jax.random.PRNGKey(0)
    k_x, k_p = jax.random.split(key)
    # LeNet5 architecturally requires 32x32 single-channel inputs.
    x = jax.random.normal(k_x, (2, 1, 32, 32), dtype=jnp.float32)  # NCHW
    num_classes = 0  # matches PyTorch default; `out` layer is skipped
    params = init_lenet5_params(k_p, num_classes=num_classes)
    prep = prepare_lenet5_params(params, image_hw=32, num_classes=num_classes)

    y = lenet5_forward(x, prep, num_classes=num_classes)
    y = jax.block_until_ready(y)
    assert y.shape == (2, 10), y.shape
    assert bool(jnp.all(jnp.isfinite(y)))

    # Validate against a pure-XLA f32 reference of the same forward pass
    # (kernel uses bf16 matmul operands with f32 accumulation).
    y_ref = _reference_forward(x, params, num_classes=num_classes)
    max_err = float(jnp.max(jnp.abs(y - y_ref)))
    assert max_err < 2e-2, max_err

    print("KERNEL_OK")
</pallas_src>

<mosaic_0001>
module attributes {stable_mosaic.version = 11 : i64} {
  func.func @_lenet5_kernel(%arg0: i32, %arg1: memref<32x8x32xf32, #tpu.memory_space<vmem>>, %arg2: memref<5x32x168xbf16, #tpu.memory_space<vmem>>, %arg3: memref<1x168xf32, #tpu.memory_space<vmem>>, %arg4: memref<168x84xbf16, #tpu.memory_space<vmem>>, %arg5: memref<5x84x160xbf16, #tpu.memory_space<vmem>>, %arg6: memref<1x160xf32, #tpu.memory_space<vmem>>, %arg7: memref<160x80xbf16, #tpu.memory_space<vmem>>, %arg8: memref<5x80x120xbf16, #tpu.memory_space<vmem>>, %arg9: memref<1x120xf32, #tpu.memory_space<vmem>>, %arg10: memref<120x84xbf16, #tpu.memory_space<vmem>>, %arg11: memref<1x84xf32, #tpu.memory_space<vmem>>, %arg12: memref<84x128xbf16, #tpu.memory_space<vmem>>, %arg13: memref<1x128xf32, #tpu.memory_space<vmem>>, %arg14: memref<8x128xf32, #tpu.memory_space<vmem>>) attributes {dimension_semantics = [#tpu.dimension_semantics<parallel>], iteration_bounds = array<i64: 1>, scalar_prefetch = 0 : i64, scratch_operands = 0 : i64, tpu.core_type = #tpu.core_type<tc>, window_params = [{transform_indices = @transform_0, window_bounds = array<i64: 32, 8, 32>}, {pipeline_mode = #tpu.pipeline_mode<synchronous>, transform_indices = @transform_1, window_bounds = array<i64: 5, 32, 168>}, {pipeline_mode = #tpu.pipeline_mode<synchronous>, transform_indices = @transform_2, window_bounds = array<i64: 1, 168>}, {pipeline_mode = #tpu.pipeline_mode<synchronous>, transform_indices = @transform_3, window_bounds = array<i64: 168, 84>}, {pipeline_mode = #tpu.pipeline_mode<synchronous>, transform_indices = @transform_4, window_bounds = array<i64: 5, 84, 160>}, {pipeline_mode = #tpu.pipeline_mode<synchronous>, transform_indices = @transform_5, window_bounds = array<i64: 1, 160>}, {pipeline_mode = #tpu.pipeline_mode<synchronous>, transform_indices = @transform_6, window_bounds = array<i64: 160, 80>}, {pipeline_mode = #tpu.pipeline_mode<synchronous>, transform_indices = @transform_7, window_bounds = array<i64: 5, 80, 120>}, {pipeline_mode = #tpu.pipeline_mode<synchronous>, transform_indices = @transform_8, window_bounds = array<i64: 1, 120>}, {pipeline_mode = #tpu.pipeline_mode<synchronous>, transform_indices = @transform_9, window_bounds = array<i64: 120, 84>}, {pipeline_mode = #tpu.pipeline_mode<synchronous>, transform_indices = @transform_10, window_bounds = array<i64: 1, 84>}, {pipeline_mode = #tpu.pipeline_mode<synchronous>, transform_indices = @transform_11, window_bounds = array<i64: 84, 128>}, {pipeline_mode = #tpu.pipeline_mode<synchronous>, transform_indices = @transform_12, window_bounds = array<i64: 1, 128>}, {transform_indices = @transform_13, window_bounds = array<i64: 8, 128>}]} {
    %c0 = arith.constant 0 : index
    %c0_0 = arith.constant 0 : index
    %c0_1 = arith.constant 0 : index
    %0 = vector.load %arg1[%c0, %c0_0, %c0_1] : memref<32x8x32xf32, #tpu.memory_space<vmem>>, vector<32x8x32xf32>
    %1 = vector.shape_cast %0 : vector<32x8x32xf32> to vector<256x32xf32>
    %2 = arith.truncf %1 : vector<256x32xf32> to vector<256x32xbf16>
    %3 = vector.extract_strided_slice %2 {offsets = [0, 0], sizes = [224, 32], strides = [1, 1]} : vector<256x32xbf16> to vector<224x32xbf16>
    %c0_2 = arith.constant 0 : index
    %c0_3 = arith.constant 0 : index
    %c0_4 = arith.constant 0 : index
    %4 = vector.load %arg2[%c0_2, %c0_3, %c0_4] : memref<5x32x168xbf16, #tpu.memory_space<vmem>>, vector<1x32x168xbf16>
    %5 = vector.shape_cast %4 : vector<1x32x168xbf16> to vector<32x168xbf16>
    %cst = arith.constant dense<0.000000e+00> : vector<224x168xf32>
    %6 = tpu.matmul %3, %5, %cst {dimension_numbers = #tpu.dot_dimension_numbers<[1], [0], [0], [1], [0, 0, 1, 1], [], []>} : vector<224x32xbf16>, vector<32x168xbf16>, vector<224x168xf32> -> vector<224x168xf32>
    %7 = vector.extract_strided_slice %2 {offsets = [8, 0], sizes = [224, 32], strides = [1, 1]} : vector<256x32xbf16> to vector<224x32xbf16>
    %c1 = arith.constant 1 : index
    %c0_5 = arith.constant 0 : index
    %c0_6 = arith.constant 0 : index
    %8 = vector.load %arg2[%c1, %c0_5, %c0_6] : memref<5x32x168xbf16, #tpu.memory_space<vmem>>, vector<1x32x168xbf16>
    %9 = vector.shape_cast %8 : vector<1x32x168xbf16> to vector<32x168xbf16>
    %cst_7 = arith.constant dense<0.000000e+00> : vector<224x168xf32>
    %10 = tpu.matmul %7, %9, %cst_7 {dimension_numbers = #tpu.dot_dimension_numbers<[1], [0], [0], [1], [0, 0, 1, 1], [], []>} : vector<224x32xbf16>, vector<32x168xbf16>, vector<224x168xf32> -> vector<224x168xf32>
    %11 = arith.addf %6, %10 : vector<224x168xf32>
    %12 = vector.extract_strided_slice %2 {offsets = [16, 0], sizes = [224, 32], strides = [1, 1]} : vector<256x32xbf16> to vector<224x32xbf16>
    %c2 = arith.constant 2 : index
    %c0_8 = arith.constant 0 : index
    %c0_9 = arith.constant 0 : index
    %13 = vector.load %arg2[%c2, %c0_8, %c0_9] : memref<5x32x168xbf16, #tpu.memory_space<vmem>>, vector<1x32x168xbf16>
    %14 = vector.shape_cast %13 : vector<1x32x168xbf16> to vector<32x168xbf16>
    %cst_10 = arith.constant dense<0.000000e+00> : vector<224x168xf32>
    %15 = tpu.matmul %12, %14, %cst_10 {dimension_numbers = #tpu.dot_dimension_numbers<[1], [0], [0], [1], [0, 0, 1, 1], [], []>} : vector<224x32xbf16>, vector<32x168xbf16>, vector<224x168xf32> -> vector<224x168xf32>
    %16 = arith.addf %11, %15 : vector<224x168xf32>
    %17 = vector.extract_strided_slice %2 {offsets = [24, 0], sizes = [224, 32], strides = [1, 1]} : vector<256x32xbf16> to vector<224x32xbf16>
    %c3 = arith.constant 3 : index
    %c0_11 = arith.constant 0 : index
    %c0_12 = arith.constant 0 : index
    %18 = vector.load %arg2[%c3, %c0_11, %c0_12] : memref<5x32x168xbf16, #tpu.memory_space<vmem>>, vector<1x32x168xbf16>
    %19 = vector.shape_cast %18 : vector<1x32x168xbf16> to vector<32x168xbf16>
    %cst_13 = arith.constant dense<0.000000e+00> : vector<224x168xf32>
    %20 = tpu.matmul %17, %19, %cst_13 {dimension_numbers = #tpu.dot_dimension_numbers<[1], [0], [0], [1], [0, 0, 1, 1], [], []>} : vector<224x32xbf16>, vector<32x168xbf16>, vector<224x168xf32> -> vector<224x168xf32>
    %21 = arith.addf %16, %20 : vector<224x168xf32>
    %22 = vector.extract_strided_slice %2 {offsets = [32, 0], sizes = [224, 32], strides = [1, 1]} : vector<256x32xbf16> to vector<224x32xbf16>
    %c4 = arith.constant 4 : index
    %c0_14 = arith.constant 0 : index
    %c0_15 = arith.constant 0 : index
    %23 = vector.load %arg2[%c4, %c0_14, %c0_15] : memref<5x32x168xbf16, #tpu.memory_space<vmem>>, vector<1x32x168xbf16>
    %24 = vector.shape_cast %23 : vector<1x32x168xbf16> to vector<32x168xbf16>
    %cst_16 = arith.constant dense<0.000000e+00> : vector<224x168xf32>
    %25 = tpu.matmul %22, %24, %cst_16 {dimension_numbers = #tpu.dot_dimension_numbers<[1], [0], [0], [1], [0, 0, 1, 1], [], []>} : vector<224x32xbf16>, vector<32x168xbf16>, vector<224x168xf32> -> vector<224x168xf32>
    %26 = arith.addf %21, %25 : vector<224x168xf32>
    %c0_17 = arith.constant 0 : index
    %c0_18 = arith.constant 0 : index
    %27 = vector.load %arg3[%c0_17, %c0_18] : memref<1x168xf32, #tpu.memory_space<vmem>>, vector<1x168xf32>
    %28 = vector.broadcast %27 : vector<1x168xf32> to vector<224x168xf32>
    %29 = arith.addf %26, %28 : vector<224x168xf32>
    %30 = math.tanh %29 : vector<224x168xf32>
    %31 = vector.shape_cast %30 : vector<224x168xf32> to vector<14x16x168xf32>
    %32 = vector.extract_strided_slice %31 {offsets = [0, 0, 0], sizes = [14, 8, 168], strides = [1, 1, 1]} : vector<14x16x168xf32> to vector<14x8x168xf32>
    %33 = vector.extract_strided_slice %31 {offsets = [0, 8, 0], sizes = [14, 8, 168], strides = [1, 1, 1]} : vector<14x16x168xf32> to vector<14x8x168xf32>
    %34 = arith.addf %32, %33 : vector<14x8x168xf32>
    %35 = vector.shape_cast %34 : vector<14x8x168xf32> to vector<112x168xf32>
    %36 = arith.truncf %35 : vector<112x168xf32> to vector<112x168xbf16>
    %c0_19 = arith.constant 0 : index
    %c0_20 = arith.constant 0 : index
    %37 = vector.load %arg4[%c0_19, %c0_20] : memref<168x84xbf16, #tpu.memory_space<vmem>>, vector<168x84xbf16>
    %cst_21 = arith.constant dense<0.000000e+00> : vector<112x84xf32>
    %38 = tpu.matmul %36, %37, %cst_21 {dimension_numbers = #tpu.dot_dimension_numbers<[1], [0], [0], [1], [0, 0, 1, 1], [], []>} : vector<112x168xbf16>, vector<168x84xbf16>, vector<112x84xf32> -> vector<112x84xf32>
    %cst_22 = arith.constant 2.500000e-01 : f32
    %39 = vector.broadcast %cst_22 : f32 to vector<112x84xf32>
    %40 = arith.mulf %38, %39 : vector<112x84xf32>
    %41 = arith.truncf %40 : vector<112x84xf32> to vector<112x84xbf16>
    %42 = vector.extract_strided_slice %41 {offsets = [0, 0], sizes = [80, 84], strides = [1, 1]} : vector<112x84xbf16> to vector<80x84xbf16>
    %c0_23 = arith.constant 0 : index
    %c0_24 = arith.constant 0 : index
    %c0_25 = arith.constant 0 : index
    %43 = vector.load %arg5[%c0_23, %c0_24, %c0_25] : memref<5x84x160xbf16, #tpu.memory_space<vmem>>, vector<1x84x160xbf16>
    %44 = vector.shape_cast %43 : vector<1x84x160xbf16> to vector<84x160xbf16>
    %cst_26 = arith.constant dense<0.000000e+00> : vector<80x160xf32>
    %45 = tpu.matmul %42, %44, %cst_26 {dimension_numbers = #tpu.dot_dimension_numbers<[1], [0], [0], [1], [0, 0, 1, 1], [], []>} : vector<80x84xbf16>, vector<84x160xbf16>, vector<80x160xf32> -> vector<80x160xf32>
    %46 = vector.extract_strided_slice %41 {offsets = [8, 0], sizes = [80, 84], strides = [1, 1]} : vector<112x84xbf16> to vector<80x84xbf16>
    %c1_27 = arith.constant 1 : index
    %c0_28 = arith.constant 0 : index
    %c0_29 = arith.constant 0 : index
    %47 = vector.load %arg5[%c1_27, %c0_28, %c0_29] : memref<5x84x160xbf16, #tpu.memory_space<vmem>>, vector<1x84x160xbf16>
    %48 = vector.shape_cast %47 : vector<1x84x160xbf16> to vector<84x160xbf16>
    %cst_30 = arith.constant dense<0.000000e+00> : vector<80x160xf32>
    %49 = tpu.matmul %46, %48, %cst_30 {dimension_numbers = #tpu.dot_dimension_numbers<[1], [0], [0], [1], [0, 0, 1, 1], [], []>} : vector<80x84xbf16>, vector<84x160xbf16>, vector<80x160xf32> -> vector<80x160xf32>
    %50 = arith.addf %45, %49 : vector<80x160xf32>
    %51 = vector.extract_strided_slice %41 {offsets = [16, 0], sizes = [80, 84], strides = [1, 1]} : vector<112x84xbf16> to vector<80x84xbf16>
    %c2_31 = arith.constant 2 : index
    %c0_32 = arith.constant 0 : index
    %c0_33 = arith.constant 0 : index
    %52 = vector.load %arg5[%c2_31, %c0_32, %c0_33] : memref<5x84x160xbf16, #tpu.memory_space<vmem>>, vector<1x84x160xbf16>
    %53 = vector.shape_cast %52 : vector<1x84x160xbf16> to vector<84x160xbf16>
    %cst_34 = arith.constant dense<0.000000e+00> : vector<80x160xf32>
    %54 = tpu.matmul %51, %53, %cst_34 {dimension_numbers = #tpu.dot_dimension_numbers<[1], [0], [0], [1], [0, 0, 1, 1], [], []>} : vector<80x84xbf16>, vector<84x160xbf16>, vector<80x160xf32> -> vector<80x160xf32>
    %55 = arith.addf %50, %54 : vector<80x160xf32>
    %56 = vector.extract_strided_slice %41 {offsets = [24, 0], sizes = [80, 84], strides = [1, 1]} : vector<112x84xbf16> to vector<80x84xbf16>
    %c3_35 = arith.constant 3 : index
    %c0_36 = arith.constant 0 : index
    %c0_37 = arith.constant 0 : index
    %57 = vector.load %arg5[%c3_35, %c0_36, %c0_37] : memref<5x84x160xbf16, #tpu.memory_space<vmem>>, vector<1x84x160xbf16>
    %58 = vector.shape_cast %57 : vector<1x84x160xbf16> to vector<84x160xbf16>
    %cst_38 = arith.constant dense<0.000000e+00> : vector<80x160xf32>
    %59 = tpu.matmul %56, %58, %cst_38 {dimension_numbers = #tpu.dot_dimension_numbers<[1], [0], [0], [1], [0, 0, 1, 1], [], []>} : vector<80x84xbf16>, vector<84x160xbf16>, vector<80x160xf32> -> vector<80x160xf32>
    %60 = arith.addf %55, %59 : vector<80x160xf32>
    %61 = vector.extract_strided_slice %41 {offsets = [32, 0], sizes = [80, 84], strides = [1, 1]} : vector<112x84xbf16> to vector<80x84xbf16>
    %c4_39 = arith.constant 4 : index
    %c0_40 = arith.constant 0 : index
    %c0_41 = arith.constant 0 : index
    %62 = vector.load %arg5[%c4_39, %c0_40, %c0_41] : memref<5x84x160xbf16, #tpu.memory_space<vmem>>, vector<1x84x160xbf16>
    %63 = vector.shape_cast %62 : vector<1x84x160xbf16> to vector<84x160xbf16>
    %cst_42 = arith.constant dense<0.000000e+00> : vector<80x160xf32>
    %64 = tpu.matmul %61, %63, %cst_42 {dimension_numbers = #tpu.dot_dimension_numbers<[1], [0], [0], [1], [0, 0, 1, 1], [], []>} : vector<80x84xbf16>, vector<84x160xbf16>, vector<80x160xf32> -> vector<80x160xf32>
    %65 = arith.addf %60, %64 : vector<80x160xf32>
    %c0_43 = arith.constant 0 : index
    %c0_44 = arith.constant 0 : index
    %66 = vector.load %arg6[%c0_43, %c0_44] : memref<1x160xf32, #tpu.memory_space<vmem>>, vector<1x160xf32>
    %67 = vector.broadcast %66 : vector<1x160xf32> to vector<80x160xf32>
    %68 = arith.addf %65, %67 : vector<80x160xf32>
    %69 = math.tanh %68 : vector<80x160xf32>
    %70 = vector.shape_cast %69 : vector<80x160xf32> to vector<5x16x160xf32>
    %71 = vector.extract_strided_slice %70 {offsets = [0, 0, 0], sizes = [5, 8, 160], strides = [1, 1, 1]} : vector<5x16x160xf32> to vector<5x8x160xf32>
    %72 = vector.extract_strided_slice %70 {offsets = [0, 8, 0], sizes = [5, 8, 160], strides = [1, 1, 1]} : vector<5x16x160xf32> to vector<5x8x160xf32>
    %73 = arith.addf %71, %72 : vector<5x8x160xf32>
    %74 = vector.shape_cast %73 : vector<5x8x160xf32> to vector<40x160xf32>
    %75 = arith.truncf %74 : vector<40x160xf32> to vector<40x160xbf16>
    %c0_45 = arith.constant 0 : index
    %c0_46 = arith.constant 0 : index
    %76 = vector.load %arg7[%c0_45, %c0_46] : memref<160x80xbf16, #tpu.memory_space<vmem>>, vector<160x80xbf16>
    %cst_47 = arith.constant dense<0.000000e+00> : vector<40x80xf32>
    %77 = tpu.matmul %75, %76, %cst_47 {dimension_numbers = #tpu.dot_dimension_numbers<[1], [0], [0], [1], [0, 0, 1, 1], [], []>} : vector<40x160xbf16>, vector<160x80xbf16>, vector<40x80xf32> -> vector<40x80xf32>
    %cst_48 = arith.constant 2.500000e-01 : f32
    %78 = vector.broadcast %cst_48 : f32 to vector<40x80xf32>
    %79 = arith.mulf %77, %78 : vector<40x80xf32>
    %80 = arith.truncf %79 : vector<40x80xf32> to vector<40x80xbf16>
    %81 = vector.extract_strided_slice %80 {offsets = [0, 0], sizes = [8, 80], strides = [1, 1]} : vector<40x80xbf16> to vector<8x80xbf16>
    %c0_49 = arith.constant 0 : index
    %c0_50 = arith.constant 0 : index
    %c0_51 = arith.constant 0 : index
    %82 = vector.load %arg8[%c0_49, %c0_50, %c0_51] : memref<5x80x120xbf16, #tpu.memory_space<vmem>>, vector<1x80x120xbf16>
    %83 = vector.shape_cast %82 : vector<1x80x120xbf16> to vector<80x120xbf16>
    %cst_52 = arith.constant dense<0.000000e+00> : vector<8x120xf32>
    %84 = tpu.matmul %81, %83, %cst_52 {dimension_numbers = #tpu.dot_dimension_numbers<[1], [0], [0], [1], [0, 0, 1, 1], [], []>} : vector<8x80xbf16>, vector<80x120xbf16>, vector<8x120xf32> -> vector<8x120xf32>
    %85 = vector.extract_strided_slice %80 {offsets = [8, 0], sizes = [8, 80], strides = [1, 1]} : vector<40x80xbf16> to vector<8x80xbf16>
    %c1_53 = arith.constant 1 : index
    %c0_54 = arith.constant 0 : index
    %c0_55 = arith.constant 0 : index
    %86 = vector.load %arg8[%c1_53, %c0_54, %c0_55] : memref<5x80x120xbf16, #tpu.memory_space<vmem>>, vector<1x80x120xbf16>
    %87 = vector.shape_cast %86 : vector<1x80x120xbf16> to vector<80x120xbf16>
    %cst_56 = arith.constant dense<0.000000e+00> : vector<8x120xf32>
    %88 = tpu.matmul %85, %87, %cst_56 {dimension_numbers = #tpu.dot_dimension_numbers<[1], [0], [0], [1], [0, 0, 1, 1], [], []>} : vector<8x80xbf16>, vector<80x120xbf16>, vector<8x120xf32> -> vector<8x120xf32>
    %89 = arith.addf %84, %88 : vector<8x120xf32>
    %90 = vector.extract_strided_slice %80 {offsets = [16, 0], sizes = [8, 80], strides = [1, 1]} : vector<40x80xbf16> to vector<8x80xbf16>
    %c2_57 = arith.constant 2 : index
    %c0_58 = arith.constant 0 : index
    %c0_59 = arith.constant 0 : index
    %91 = vector.load %arg8[%c2_57, %c0_58, %c0_59] : memref<5x80x120xbf16, #tpu.memory_space<vmem>>, vector<1x80x120xbf16>
    %92 = vector.shape_cast %91 : vector<1x80x120xbf16> to vector<80x120xbf16>
    %cst_60 = arith.constant dense<0.000000e+00> : vector<8x120xf32>
    %93 = tpu.matmul %90, %92, %cst_60 {dimension_numbers = #tpu.dot_dimension_numbers<[1], [0], [0], [1], [0, 0, 1, 1], [], []>} : vector<8x80xbf16>, vector<80x120xbf16>, vector<8x120xf32> -> vector<8x120xf32>
    %94 = arith.addf %89, %93 : vector<8x120xf32>
    %95 = vector.extract_strided_slice %80 {offsets = [24, 0], sizes = [8, 80], strides = [1, 1]} : vector<40x80xbf16> to vector<8x80xbf16>
    %c3_61 = arith.constant 3 : index
    %c0_62 = arith.constant 0 : index
    %c0_63 = arith.constant 0 : index
    %96 = vector.load %arg8[%c3_61, %c0_62, %c0_63] : memref<5x80x120xbf16, #tpu.memory_space<vmem>>, vector<1x80x120xbf16>
    %97 = vector.shape_cast %96 : vector<1x80x120xbf16> to vector<80x120xbf16>
    %cst_64 = arith.constant dense<0.000000e+00> : vector<8x120xf32>
    %98 = tpu.matmul %95, %97, %cst_64 {dimension_numbers = #tpu.dot_dimension_numbers<[1], [0], [0], [1], [0, 0, 1, 1], [], []>} : vector<8x80xbf16>, vector<80x120xbf16>, vector<8x120xf32> -> vector<8x120xf32>
    %99 = arith.addf %94, %98 : vector<8x120xf32>
    %100 = vector.extract_strided_slice %80 {offsets = [32, 0], sizes = [8, 80], strides = [1, 1]} : vector<40x80xbf16> to vector<8x80xbf16>
    %c4_65 = arith.constant 4 : index
    %c0_66 = arith.constant 0 : index
    %c0_67 = arith.constant 0 : index
    %101 = vector.load %arg8[%c4_65, %c0_66, %c0_67] : memref<5x80x120xbf16, #tpu.memory_space<vmem>>, vector<1x80x120xbf16>
    %102 = vector.shape_cast %101 : vector<1x80x120xbf16> to vector<80x120xbf16>
    %cst_68 = arith.constant dense<0.000000e+00> : vector<8x120xf32>
    %103 = tpu.matmul %100, %102, %cst_68 {dimension_numbers = #tpu.dot_dimension_numbers<[1], [0], [0], [1], [0, 0, 1, 1], [], []>} : vector<8x80xbf16>, vector<80x120xbf16>, vector<8x120xf32> -> vector<8x120xf32>
    %104 = arith.addf %99, %103 : vector<8x120xf32>
    %c0_69 = arith.constant 0 : index
    %c0_70 = arith.constant 0 : index
    %105 = vector.load %arg9[%c0_69, %c0_70] : memref<1x120xf32, #tpu.memory_space<vmem>>, vector<1x120xf32>
    %106 = vector.broadcast %105 : vector<1x120xf32> to vector<8x120xf32>
    %107 = arith.addf %104, %106 : vector<8x120xf32>
    %108 = math.tanh %107 : vector<8x120xf32>
    %109 = arith.truncf %108 : vector<8x120xf32> to vector<8x120xbf16>
    %c0_71 = arith.constant 0 : index
    %c0_72 = arith.constant 0 : index
    %110 = vector.load %arg10[%c0_71, %c0_72] : memref<120x84xbf16, #tpu.memory_space<vmem>>, vector<120x84xbf16>
    %cst_73 = arith.constant dense<0.000000e+00> : vector<8x84xf32>
    %111 = tpu.matmul %109, %110, %cst_73 {dimension_numbers = #tpu.dot_dimension_numbers<[1], [0], [0], [1], [0, 0, 1, 1], [], []>} : vector<8x120xbf16>, vector<120x84xbf16>, vector<8x84xf32> -> vector<8x84xf32>
    %c0_74 = arith.constant 0 : index
    %c0_75 = arith.constant 0 : index
    %112 = vector.load %arg11[%c0_74, %c0_75] : memref<1x84xf32, #tpu.memory_space<vmem>>, vector<1x84xf32>
    %113 = vector.broadcast %112 : vector<1x84xf32> to vector<8x84xf32>
    %114 = arith.addf %111, %113 : vector<8x84xf32>
    %115 = math.tanh %114 : vector<8x84xf32>
    %116 = arith.truncf %115 : vector<8x84xf32> to vector<8x84xbf16>
    %c0_76 = arith.constant 0 : index
    %c0_77 = arith.constant 0 : index
    %117 = vector.load %arg12[%c0_76, %c0_77] : memref<84x128xbf16, #tpu.memory_space<vmem>>, vector<84x128xbf16>
    %cst_78 = arith.constant dense<0.000000e+00> : vector<8x128xf32>
    %118 = tpu.matmul %116, %117, %cst_78 {dimension_numbers = #tpu.dot_dimension_numbers<[1], [0], [0], [1], [0, 0, 1, 1], [], []>} : vector<8x84xbf16>, vector<84x128xbf16>, vector<8x128xf32> -> vector<8x128xf32>
    %c0_79 = arith.constant 0 : index
    %c0_80 = arith.constant 0 : index
    %119 = vector.load %arg13[%c0_79, %c0_80] : memref<1x128xf32, #tpu.memory_space<vmem>>, vector<1x128xf32>
    %120 = vector.broadcast %119 : vector<1x128xf32> to vector<8x128xf32>
    %121 = arith.addf %118, %120 : vector<8x128xf32>
    %c0_81 = arith.constant 0 : index
    %c0_82 = arith.constant 0 : index
    %122 = vector.load %arg14[%c0_81, %c0_82] : memref<8x128xf32, #tpu.memory_space<vmem>>, vector<8x128xf32>
    tpu.vector_store %arg14[%c0_81, %c0_82], %121 {strides = array<i32>} : memref<8x128xf32, #tpu.memory_space<vmem>>, vector<8x128xf32>,
    return
  }
  func.func @transform_0(%arg0: i32) -> (i32, i32, i32) {
    %c0_i32 = arith.constant 0 : i32
    %c0_i32_0 = arith.constant 0 : i32
    %c0_i32_1 = arith.constant 0 : i32
    return %c0_i32, %arg0, %c0_i32_0 : i32, i32, i32
  }
  func.func @transform_1(%arg0: i32) -> (i32, i32, i32) {
    %c0_i32 = arith.constant 0 : i32
    %c0_i32_0 = arith.constant 0 : i32
    %c0_i32_1 = arith.constant 0 : i32
    %c0_i32_2 = arith.constant 0 : i32
    return %c0_i32, %c0_i32_0, %c0_i32_1 : i32, i32, i32
  }
  func.func @transform_2(%arg0: i32) -> (i32, i32) {
    %c0_i32 = arith.constant 0 : i32
    %c0_i32_0 = arith.constant 0 : i32
    %c0_i32_1 = arith.constant 0 : i32
    return %c0_i32, %c0_i32_0 : i32, i32
  }
  func.func @transform_3(%arg0: i32) -> (i32, i32) {
    %c0_i32 = arith.constant 0 : i32
    %c0_i32_0 = arith.constant 0 : i32
    %c0_i32_1 = arith.constant 0 : i32
    return %c0_i32, %c0_i32_0 : i32, i32
  }
  func.func @transform_4(%arg0: i32) -> (i32, i32, i32) {
    %c0_i32 = arith.constant 0 : i32
    %c0_i32_0 = arith.constant 0 : i32
    %c0_i32_1 = arith.constant 0 : i32
    %c0_i32_2 = arith.constant 0 : i32
    return %c0_i32, %c0_i32_0, %c0_i32_1 : i32, i32, i32
  }
  func.func @transform_5(%arg0: i32) -> (i32, i32) {
    %c0_i32 = arith.constant 0 : i32
    %c0_i32_0 = arith.constant 0 : i32
    %c0_i32_1 = arith.constant 0 : i32
    return %c0_i32, %c0_i32_0 : i32, i32
  }
  func.func @transform_6(%arg0: i32) -> (i32, i32) {
    %c0_i32 = arith.constant 0 : i32
    %c0_i32_0 = arith.constant 0 : i32
    %c0_i32_1 = arith.constant 0 : i32
    return %c0_i32, %c0_i32_0 : i32, i32
  }
  func.func @transform_7(%arg0: i32) -> (i32, i32, i32) {
    %c0_i32 = arith.constant 0 : i32
    %c0_i32_0 = arith.constant 0 : i32
    %c0_i32_1 = arith.constant 0 : i32
    %c0_i32_2 = arith.constant 0 : i32
    return %c0_i32, %c0_i32_0, %c0_i32_1 : i32, i32, i32
  }
  func.func @transform_8(%arg0: i32) -> (i32, i32) {
    %c0_i32 = arith.constant 0 : i32
    %c0_i32_0 = arith.constant 0 : i32
    %c0_i32_1 = arith.constant 0 : i32
    return %c0_i32, %c0_i32_0 : i32, i32
  }
  func.func @transform_9(%arg0: i32) -> (i32, i32) {
    %c0_i32 = arith.constant 0 : i32
    %c0_i32_0 = arith.constant 0 : i32
    %c0_i32_1 = arith.constant 0 : i32
    return %c0_i32, %c0_i32_0 : i32, i32
  }
  func.func @transform_10(%arg0: i32) -> (i32, i32) {
    %c0_i32 = arith.constant 0 : i32
    %c0_i32_0 = arith.constant 0 : i32
    %c0_i32_1 = arith.constant 0 : i32
    return %c0_i32, %c0_i32_0 : i32, i32
  }
  func.func @transform_11(%arg0: i32) -> (i32, i32) {
    %c0_i32 = arith.constant 0 : i32
    %c0_i32_0 = arith.constant 0 : i32
    %c0_i32_1 = arith.constant 0 : i32
    return %c0_i32, %c0_i32_0 : i32, i32
  }
  func.func @transform_12(%arg0: i32) -> (i32, i32) {
    %c0_i32 = arith.constant 0 : i32
    %c0_i32_0 = arith.constant 0 : i32
    %c0_i32_1 = arith.constant 0 : i32
    return %c0_i32, %c0_i32_0 : i32, i32
  }
  func.func @transform_13(%arg0: i32) -> (i32, i32) {
    %c0_i32 = arith.constant 0 : i32
    %c0_i32_0 = arith.constant 0 : i32
    return %arg0, %c0_i32 : i32, i32
  }
}

</mosaic_0001>

<bundles_post_ra>
// kernel: lenet5_forward.1
= control target key start
LH: loop header
LB: loop body
LE: loop exit
PB: predicated region body
PF: predicated region fallthrough
CT: control target
= control target key end

     0   :  { %v4708_v1 = vmov 0   ;;  %vm117_vm0 = vcmask 1043456   ;;  %vm167_vm1 = vcmask 261120   ;;  %vm1642_vm2 = vcmask 326656   ;;  %s5979_s1 = inlined_call_operand.vmem [shape: bf16[5,32,168], index: 1, kind: input, shape index: {}]   ;;  %s5980_s0 = inlined_call_operand.vmem [shape: f32[32,8,32], index: 0, kind: input, shape index: {}]   ;;  %s5981_s3 = inlined_call_operand.vmem [shape: bf16[168,84], index: 3, kind: input, shape index: {}]   ;;  %s5982_s2 = inlined_call_operand.vmem [shape: f32[1,168], index: 2, kind: input, shape index: {}]   ;;  %s5983_s4 = inlined_call_operand.vmem [shape: bf16[5,84,160], index: 4, kind: input, shape index: {}]   ;;  %s5984_s6 = inlined_call_operand.vmem [shape: bf16[160,80], index: 6, kind: input, shape index: {}]   ;;  %s5985_s7 = inlined_call_operand.vmem [shape: bf16[5,80,120], index: 7, kind: input, shape index: {}]   ;;  %s5986_s5 = inlined_call_operand.vmem [shape: f32[1,160], index: 5, kind: input, shape index: {}]   ;;  %s5987_s9 = inlined_call_operand.vmem [shape: bf16[120,84], index: 9, kind: input, shape index: {}]   ;;  %s5988_s11 = inlined_call_operand.vmem [shape: bf16[84,128], index: 11, kind: input, shape index: {}]   ;;  %s5989_s8 = inlined_call_operand.vmem [shape: f32[1,120], index: 8, kind: input, shape index: {}]   ;;  %s5990_s10 = inlined_call_operand.vmem [shape: f32[1,84], index: 10, kind: input, shape index: {}]   ;;  %s5991_s12 = inlined_call_operand.vmem [shape: f32[1,128], index: 12, kind: input, shape index: {}]   ;;  %s5992_s13 = inlined_call_operand.vmem [shape: f32[8,128], index: 13, kind: output, shape index: {}]  }
   0x1   :  { %v4377_v0 = vld [vmem:[%s5979_s1 + $0x24] ss:$8 sps:$4 sm:$0xff]   ;;  %242 = vmatprep.mubr.bf16.mxu0 %v4708_v1  ;;  %302 = vmatprep.mubr.bf16.mxu1 %v4708_v1  ;;  %v4379_v2 = vld [vmem:[%s5979_s1 + $0x20] ss:$8 sps:$4 sm:$0xff]   ;;  %v4380_v3 = vld [vmem:[%s5979_s1 + $0x34] ss:$8 sps:$4 sm:$0xff]  }
   0x2   :  { %210 = vmatprep.subr.bf16.mxu0 %v4377_v0  ;;  %v4382_v4 = vld [vmem:[%s5979_s1 + $0x30] ss:$8 sps:$4 sm:$0xff]   ;;  %v45_v5 = vld [vmem:[%s5980_s0] sm:$0xff]  ;;  %4066 = vmatprep.subr.bf16.mxu1 %v4377_v0  ;;  %v46_v6 = vld [vmem:[%s5980_s0 + $0x8] sm:$0xff]  ;;  %vm1889_vm3 = vcmask 1041408   ;;  %vm1873_vm4 = vcmask 687104  }
   0x3   :  { %211 = vmatpush1.bf16.msra.mxu0 %v4379_v2  ;;  %v47_v7 = vld [vmem:[%s5980_s0 + $0x10] sm:$0xff]  ;;  %v48_v8 = vld [vmem:[%s5980_s0 + $0x18] sm:$0xff]  ;;  %4068 = vmatpush1.bf16.msra.mxu1 %v4379_v2  ;;  %v77_v9 = vpack.c.bf16 %v46_v6, %v45_v5  ;;  %v4385_v11 = vld [vmem:[%s5979_s1 + $0x4] ss:$8 sps:$4 sm:$0xff]   ;;  %vm4710_vm5 = vmmov 0   ;;  %vm2952_vm6 = vcmask 654336  }
   0x4   :  { %212 = vmatprep.subr.bf16.mxu0 %v4380_v3  ;;  %v4807_v10 = vpack.c.bf16 %v48_v8, %v47_v7  ;;  %4067 = vmatprep.subr.bf16.mxu1 %v4380_v3  ;;  %v49_v12 = vld [vmem:[%s5980_s0 + $0x20] sm:$0xff]  ;;  %v50_v13 = vld [vmem:[%s5980_s0 + $0x28] sm:$0xff]  ;;  %v4388_v19 = vld [vmem:[%s5979_s1 + $0x14] ss:$8 sps:$4 sm:$0xff]   ;;  %vm3403_vm7 = vcmask 982016  }
   0x5   :  { %v118_v14 = vrot.slane %v77_v9, 4  ;;  %v4383_v16 = vld [vmem:[%s5979_s1] ss:$8 sps:$4 sm:$0xff]   ;;  %v4822_v17 = vpack.c.bf16 %v50_v13, %v49_v12  ;;  %v51_v21 = vld [vmem:[%s5980_s0 + $0x30] sm:$0xff]  ;;  %v52_v22 = vld [vmem:[%s5980_s0 + $0x38] sm:$0xff] }
   0x6   :  { %v119_v15 = vrot.slane %v4807_v10, 4  ;;  %v4386_v23 = vld [vmem:[%s5979_s1 + $0x10] ss:$8 sps:$4 sm:$0xff]   ;;  %v4391_v24 = vld [vmem:[%s5979_s1 + $0x44] ss:$8 sps:$4 sm:$0xff]   ;;  %v4847_v26 = vpack.c.bf16 %v52_v22, %v51_v21 }
   0x7   :  { %213 = vmatpush1.bf16.msra.mxu0 %v4382_v4  ;;  %4069 = vmatpush1.bf16.msra.mxu1 %v4382_v4  ;;  %v121_v20 = vrot.slane %v4822_v17, 4  ;;  %v53_v28 = vld [vmem:[%s5980_s0 + $0x40] sm:$0xff]  ;;  %v54_v29 = vld [vmem:[%s5980_s0 + $0x48] sm:$0xff]  ;;  %v55_v33 = vld [vmem:[%s5980_s0 + $0x50] sm:$0xff] }
   0x8   :  { %v120_v18 = vsel %vm117_vm0, %v118_v14, %v119_v15  ;;  %445 = vmatprep.subr.bf16.mxu0 %v4385_v11  ;;  %1668 = vmatprep.subr.bf16.mxu1 %v4708_v1  ;;  %v123_v27 = vrot.slane %v4847_v26, 4  ;;  %v4862_v31 = vpack.c.bf16 %v54_v29, %v53_v28  ;;  %v56_v34 = vld [vmem:[%s5980_s0 + $0x58] sm:$0xff]  ;;  %v57_v38 = vld [vmem:[%s5980_s0 + $0x60] sm:$0xff]  ;;  %v58_v39 = vld [vmem:[%s5980_s0 + $0x68] sm:$0xff] }
   0x9   :  { %v4845_v25 = vsel %vm117_vm0, %v119_v15, %v121_v20  ;;  %v4877_v36 = vpack.c.bf16 %v56_v34, %v55_v33  ;;  %v4892_v41 = vpack.c.bf16 %v58_v39, %v57_v38  ;;  %v4389_v44 = vld [vmem:[%s5979_s1 + $0x40] ss:$8 sps:$4 sm:$0xff]   ;;  %v4394_v45 = vld [vmem:[%s5979_s1 + $0x54] ss:$8 sps:$4 sm:$0xff]   ;;  %v4392_v46 = vld [vmem:[%s5979_s1 + $0x50] ss:$8 sps:$4 sm:$0xff]  }
   0xa   :  { %3562 = vmatmul.mubr.msk.bf16.vlgmr.msra.gmra.mrb[0].mxu0 %vm167_vm1, %v120_v18  ;;  %v4860_v30 = vsel %vm117_vm0, %v121_v20, %v123_v27  ;;  %v125_v32 = vrot.slane %v4862_v31, 4  ;;  %v4397_v47 = vld [vmem:[%s5979_s1 + $0x64] ss:$8 sps:$4 sm:$0xff]   ;;  %v59_v48 = vld [vmem:[%s5980_s0 + $0x70] sm:$0xff]  ;;  %v60_v49 = vld [vmem:[%s5980_s0 + $0x78] sm:$0xff] }
   0xb   :  { %446 = vmatpush1.bf16.msra.mxu0 %v4383_v16  ;;  %252 = vmatprep.mubr.bf16.mxu0 %v4708_v1  ;;  %v127_v37 = vrot.slane %v4877_v36, 4  ;;  %v129_v42 = vrot.slane %v4892_v41, 4  ;;  %v4944_v50 = vpack.c.bf16 %v60_v49, %v59_v48  ;;  %v61_v51 = vld [vmem:[%s5980_s0 + $0x80] sm:$0xff]  ;;  %v62_v52 = vld [vmem:[%s5980_s0 + $0x88] sm:$0xff]  ;;  %v63_v54 = vld [vmem:[%s5980_s0 + $0x90] sm:$0xff] }
   0xc   :  { %447 = vmatprep.subr.bf16.mxu0 %v4388_v19  ;;  %v4875_v35 = vsel %vm117_vm0, %v123_v27, %v125_v32  ;;  %v4955_v53 = vpack.c.bf16 %v62_v52, %v61_v51  ;;  %v64_v55 = vld [vmem:[%s5980_s0 + $0x98] sm:$0xff]  ;;  %v65_v57 = vld [vmem:[%s5980_s0 + $0xa0] sm:$0xff]  ;;  %v66_v58 = vld [vmem:[%s5980_s0 + $0xa8] sm:$0xff] }
   0xd   :  { %v4890_v40 = vsel %vm117_vm0, %v125_v32, %v127_v37  ;;  %v4901_v43 = vsel %vm117_vm0, %v127_v37, %v129_v42  ;;  %v4966_v56 = vpack.c.bf16 %v64_v55, %v63_v54  ;;  %v4977_v59 = vpack.c.bf16 %v66_v58, %v65_v57  ;;  %v67_v60 = vld [vmem:[%s5980_s0 + $0xb0] sm:$0xff]  ;;  %v68_v61 = vld [vmem:[%s5980_s0 + $0xb8] sm:$0xff]  ;;  %v69_v63 = vld [vmem:[%s5980_s0 + $0xc0] sm:$0xff] }
   0xe   :  { %v4988_v62 = vpack.c.bf16 %v68_v61, %v67_v60  ;;  %v70_v0 = vld [vmem:[%s5980_s0 + $0xc8] sm:$0xff]  ;;  %v71_v3 = vld [vmem:[%s5980_s0 + $0xd0] sm:$0xff]  ;;  %v72_v4 = vld [vmem:[%s5980_s0 + $0xd8] sm:$0xff]  ;;  %v133_v12 = vrot.slane %v4955_v53, 4 }
   0xf   :  { %448 = vmatpush1.bf16.msra.mxu0 %v4386_v23  ;;  %v4999_v2 = vpack.c.bf16 %v70_v0, %v69_v63  ;;  %v5010_v5 = vpack.c.bf16 %v72_v4, %v71_v3  ;;  %v4395_v6 = vld [vmem:[%s5979_s1 + $0x60] ss:$8 sps:$4 sm:$0xff]   ;;  %v4400_v7 = vld [vmem:[%s5979_s1 + $0x74] ss:$8 sps:$4 sm:$0xff]   ;;  %v4398_v8 = vld [vmem:[%s5979_s1 + $0x70] ss:$8 sps:$4 sm:$0xff]  }
  0x10   :  { %646 = vmatprep.subr.bf16.mxu0 %v4391_v24  ;;  %v135_v14 = vrot.slane %v4966_v56, 4  ;;  %v137_v16 = vrot.slane %v4977_v59, 4  ;;  %v139_v19 = vrot.slane %v4988_v62, 4  ;;  %v73_v27 = vld [vmem:[%s5980_s0 + $0xe0] sm:$0xff]  ;;  %v74_v28 = vld [vmem:[%s5980_s0 + $0xe8] sm:$0xff] }
  0x11   :  { %v141_v21 = vrot.slane %v4999_v2, 4  ;;  %v143_v23 = vrot.slane %v5010_v5, 4  ;;  %v5099_v29 = vpack.c.bf16 %v74_v28, %v73_v27  ;;  %v4401_v34 = vld [vmem:[%s5979_s1 + $0x80] ss:$8 sps:$4 sm:$0xff]   ;;  %v4406_v37 = vld [vmem:[%s5979_s1 + $0x94] ss:$8 sps:$4 sm:$0xff]  }
  0x12   :  { %3563 = vmatmul.mubr.msk.bf16.gmra.mrb[4].mxu0 %vm167_vm1, %v4845_v25  ;;  %v5060_v15 = vsel %vm117_vm0, %v133_v12, %v135_v14  ;;  %v138_v18 = vsel %vm117_vm0, %v135_v14, %v137_v16  ;;  %v140_v20 = vsel %vm117_vm0, %v137_v16, %v139_v19  ;;  %v4404_v38 = vld [vmem:[%s5979_s1 + $0x90] ss:$8 sps:$4 sm:$0xff]   ;;  %v4408_v39 = vld [vmem:[%s5981_s3 + $0x8] sm:$0xff]  }
  0x13   :  { %262 = vmatprep.mubr.bf16.mxu0 %v4708_v1  ;;  %v142_v22 = vsel %vm117_vm0, %v139_v19, %v141_v21  ;;  %v144_v24 = vsel %vm117_vm0, %v141_v21, %v143_v23  ;;  %v145_v32 = vrot.slane %v5099_v29, 4  ;;  %v1394_v19 = vlaneseq }
  0x15   :  { %v146_v33 = vsel %vm117_vm0, %v143_v23, %v145_v32 }
  0x1a   :  { %3564 = vmatmul.mubr.msk.bf16.gmra.mrb[8].mxu0 %vm167_vm1, %v4860_v30 }
  0x1b   :  { %272 = vmatprep.mubr.bf16.mxu0 %v4708_v1 }
  0x22   :  { %3565 = vmatmul.mubr.msk.bf16.gmra.mrb[12].mxu0 %vm167_vm1, %v4875_v35 }
  0x23   :  { %282 = vmatprep.mubr.bf16.mxu0 %v4708_v1 }
  0x2a   :  { %3566 = vmatmul.mubr.msk.bf16.gmra.mrb[16].mxu0 %vm167_vm1, %v4890_v40 }
  0x2b   :  { %292 = vmatprep.mubr.bf16.mxu0 %v4708_v1 }
  0x32   :  { %3567 = vmatmul.mubr.msk.bf16.gmra.mrb[20].mxu0 %vm167_vm1, %v4901_v43 }
  0x33   :  { %477 = vmatprep.mubr.bf16.mxu0 %v4708_v1 }
  0x3a   :  { %3580 = vmatmul.mubr.msk.bf16.vlgmr.msra.gmra.mrb[0].mxu0 %vm167_vm1, %v77_v9  ;;  %v4403_v9 = vld [vmem:[%s5979_s1 + $0x84] ss:$8 sps:$4 sm:$0xff]  }
  0x3b   :  { %647 = vmatpush1.bf16.msra.mxu0 %v4389_v44  ;;  %487 = vmatprep.mubr.bf16.mxu0 %v4708_v1  ;;  %v4410_v44 = vld [vmem:[%s5981_s3 + $0x18] sm:$0xff]  }
  0x3c   :  { %648 = vmatprep.subr.bf16.mxu0 %v4394_v45 }
  0x3f   :  { %649 = vmatpush1.bf16.msra.mxu0 %v4392_v46  ;;  %v4416_v46 = vld [vmem:[%s5981_s3 + $0x48] sm:$0xff]  }
  0x40   :  { %906 = vmatprep.subr.bf16.mxu0 %v4397_v47  ;;  %v4417_v47 = vld [vmem:[%s5981_s3 + $0x50] ss:$0 sps:$4 sm:$0xff]  }
  0x41   :  { %v1666_v48 = vsel %vm117_vm0, %v4417_v47, 0 }
  0x42   :  { %3581 = vmatmul.mubr.msk.bf16.gmra.mrb[4].mxu0 %vm167_vm1, %v4807_v10 }
  0x43   :  { %497 = vmatprep.mubr.bf16.mxu0 %v4708_v1 }
  0x4a   :  { %3582 = vmatmul.mubr.msk.bf16.gmra.mrb[8].mxu0 %vm167_vm1, %v4822_v17 }
  0x4b   :  { %507 = vmatprep.mubr.bf16.mxu0 %v4708_v1 }
  0x52   :  { %3583 = vmatmul.mubr.msk.bf16.gmra.mrb[12].mxu0 %vm167_vm1, %v4847_v26 }
  0x53   :  { %517 = vmatprep.mubr.bf16.mxu0 %v4708_v1 }
  0x5a   :  { %3584 = vmatmul.mubr.msk.bf16.gmra.mrb[16].mxu0 %vm167_vm1, %v4862_v31 }
  0x5b   :  { %527 = vmatprep.mubr.bf16.mxu0 %v4708_v1 }
  0x62   :  { %3585 = vmatmul.mubr.msk.bf16.gmra.mrb[20].mxu0 %vm167_vm1, %v4877_v36 }
  0x63   :  { %537 = vmatprep.mubr.bf16.mxu0 %v4708_v1 }
  0x6a   :  { %3586 = vmatmul.mubr.msk.bf16.gmra.mrb[24].mxu0 %vm167_vm1, %v4892_v41 }
  0x6b   :  { %547 = vmatprep.mubr.bf16.mxu0 %v4708_v1 }
  0x72   :  { %3587 = vmatmul.mubr.msk.bf16.gmra.mrb[28].mxu0 %vm167_vm1, %v4944_v50 }
  0x73   :  { %557 = vmatprep.mubr.bf16.mxu0 %v4708_v1 }
  0x7a   :  { %3588 = vmatmul.mubr.msk.bf16.gmra.mrb[32].mxu0 %vm167_vm1, %v4955_v53 }
  0x7b   :  { %567 = vmatprep.mubr.bf16.mxu0 %v4708_v1 }
  0x82   :  { %3589 = vmatmul.mubr.msk.bf16.gmra.mrb[36].mxu0 %vm167_vm1, %v4966_v56 }
  0x83   :  { %577 = vmatprep.mubr.bf16.mxu0 %v4708_v1 }
  0x8a   :  { %3590 = vmatmul.mubr.msk.bf16.gmra.mrb[40].mxu0 %vm167_vm1, %v4977_v59 }
  0x8b   :  { %587 = vmatprep.mubr.bf16.mxu0 %v4708_v1 }
  0x92   :  { %3591 = vmatmul.mubr.msk.bf16.gmra.mrb[44].mxu0 %vm167_vm1, %v4988_v62 }
  0x93   :  { %597 = vmatprep.mubr.bf16.mxu0 %v4708_v1 }
  0x9a   :  { %3592 = vmatmul.mubr.msk.bf16.gmra.mrb[48].mxu0 %vm167_vm1, %v4999_v2 }
  0x9b   :  { %607 = vmatprep.mubr.bf16.mxu0 %v4708_v1 }
  0xa2   :  { %3593 = vmatmul.mubr.msk.bf16.gmra.mrb[52].mxu0 %vm167_vm1, %v5010_v5 }
  0xa3   :  { %678 = vmatprep.mubr.bf16.mxu0 %v4708_v1 }
  0xaa   :  { %3602 = vmatmul.mubr.msk.bf16.vlgmr.msra.gmra.mrb[0].mxu0 %vm167_vm1, %v4807_v10  ;;  %v131_v10 = vrot.slane %v4944_v50, 4 }
  0xab   :  { %907 = vmatpush1.bf16.msra.mxu0 %v4395_v6  ;;  %688 = vmatprep.mubr.bf16.mxu0 %v4708_v1 }
  0xac   :  { %908 = vmatprep.subr.bf16.mxu0 %v4400_v7  ;;  %v5040_v11 = vsel %vm117_vm0, %v129_v42, %v131_v10  ;;  %v5050_v13 = vsel %vm117_vm0, %v131_v10, %v133_v12  ;;  %v4409_v42 = vld [vmem:[%s5981_s3 + $0x10] sm:$0xff]  }
  0xad   :  { %3568 = vmatmul.mubr.msk.bf16.vlgmr.msra.gmra.mrb[0].mxu1 %vm167_vm1, %v5040_v11 }
  0xae   :  { %312 = vmatprep.mubr.bf16.mxu1 %v4708_v1 }
  0xaf   :  { %909 = vmatpush1.bf16.msra.mxu0 %v4398_v8 }
  0xb0   :  { %1163 = vmatprep.subr.bf16.mxu0 %v4403_v9 }
  0xb2   :  { %3603 = vmatmul.mubr.msk.bf16.gmra.mrb[4].mxu0 %vm167_vm1, %v4822_v17 }
  0xb3   :  { %698 = vmatprep.mubr.bf16.mxu0 %v4708_v1 }
  0xb5   :  { %3569 = vmatmul.mubr.msk.bf16.gmra.mrb[4].mxu1 %vm167_vm1, %v5050_v13 }
  0xb6   :  { %322 = vmatprep.mubr.bf16.mxu1 %v4708_v1 }
  0xba   :  { %3604 = vmatmul.mubr.msk.bf16.gmra.mrb[8].mxu0 %vm167_vm1, %v4847_v26 }
  0xbb   :  { %708 = vmatprep.mubr.bf16.mxu0 %v4708_v1 }
  0xbd   :  { %3570 = vmatmul.mubr.msk.bf16.gmra.mrb[8].mxu1 %vm167_vm1, %v5060_v15 }
  0xbe   :  { %332 = vmatprep.mubr.bf16.mxu1 %v4708_v1 }
  0xc2   :  { %3605 = vmatmul.mubr.msk.bf16.gmra.mrb[12].mxu0 %vm167_vm1, %v4862_v31 }
  0xc3   :  { %718 = vmatprep.mubr.bf16.mxu0 %v4708_v1 }
  0xc5   :  { %3571 = vmatmul.mubr.msk.bf16.gmra.mrb[12].mxu1 %vm167_vm1, %v138_v18 }
  0xc6   :  { %342 = vmatprep.mubr.bf16.mxu1 %v4708_v1 }
  0xca   :  { %3606 = vmatmul.mubr.msk.bf16.gmra.mrb[16].mxu0 %vm167_vm1, %v4877_v36 }
  0xcb   :  { %728 = vmatprep.mubr.bf16.mxu0 %v4708_v1 }
  0xcd   :  { %3572 = vmatmul.mubr.msk.bf16.gmra.mrb[16].mxu1 %vm167_vm1, %v140_v20 }
  0xce   :  { %352 = vmatprep.mubr.bf16.mxu1 %v4708_v1 }
  0xd2   :  { %3607 = vmatmul.mubr.msk.bf16.gmra.mrb[20].mxu0 %vm167_vm1, %v4892_v41 }
  0xd3   :  { %738 = vmatprep.mubr.bf16.mxu0 %v4708_v1 }
  0xd5   :  { %3573 = vmatmul.mubr.msk.bf16.gmra.mrb[20].mxu1 %vm167_vm1, %v142_v22 }
  0xd6   :  { %362 = vmatprep.mubr.bf16.mxu1 %v4708_v1 }
  0xda   :  { %3608 = vmatmul.mubr.msk.bf16.gmra.mrb[24].mxu0 %vm167_vm1, %v4944_v50 }
  0xdb   :  { %748 = vmatprep.mubr.bf16.mxu0 %v4708_v1 }
  0xdd   :  { %3574 = vmatmul.mubr.msk.bf16.gmra.mrb[24].mxu1 %vm167_vm1, %v144_v24 }
  0xde   :  { %372 = vmatprep.mubr.bf16.mxu1 %v4708_v1 }
  0xe2   :  { %3609 = vmatmul.mubr.msk.bf16.gmra.mrb[28].mxu0 %vm167_vm1, %v4955_v53 }
  0xe3   :  { %758 = vmatprep.mubr.bf16.mxu0 %v4708_v1 }
  0xe5   :  { %3575 = vmatmul.mubr.msk.bf16.gmra.mrb[28].mxu1 %vm167_vm1, %v146_v33 }
  0xea   :  { %3610 = vmatmul.mubr.msk.bf16.gmra.mrb[32].mxu0 %vm167_vm1, %v4966_v56 }
  0xeb   :  { %768 = vmatprep.mubr.bf16.mxu0 %v4708_v1 }
  0xf2   :  { %3611 = vmatmul.mubr.msk.bf16.gmra.mrb[36].mxu0 %vm167_vm1, %v4977_v59 }
  0xf3   :  { %778 = vmatprep.mubr.bf16.mxu0 %v4708_v1 }
  0xfa   :  { %3612 = vmatmul.mubr.msk.bf16.gmra.mrb[40].mxu0 %vm167_vm1, %v4988_v62 }
  0xfb   :  { %788 = vmatprep.mubr.bf16.mxu0 %v4708_v1 }
 0x102   :  { %3613 = vmatmul.mubr.msk.bf16.gmra.mrb[44].mxu0 %vm167_vm1, %v4999_v2 }
 0x103   :  { %798 = vmatprep.mubr.bf16.mxu0 %v4708_v1 }
 0x10a   :  { %3614 = vmatmul.mubr.msk.bf16.gmra.mrb[48].mxu0 %vm167_vm1, %v5010_v5 }
 0x10b   :  { %808 = vmatprep.mubr.bf16.mxu0 %v4708_v1 }
 0x112   :  { %3615 = vmatmul.mubr.msk.bf16.gmra.mrb[52].mxu0 %vm167_vm1, %v5099_v29 }
 0x113   :  { %938 = vmatprep.mubr.bf16.mxu0 %v4708_v1 }
 0x11a   :  { %3624 = vmatmul.mubr.msk.bf16.vlgmr.msra.gmra.mrb[0].mxu0 %vm167_vm1, %v4845_v25  ;;  %v75_v25 = vld [vmem:[%s5980_s0 + $0xf0] sm:$0xff] }
 0x11b   :  { %1164 = vmatpush1.bf16.msra.mxu0 %v4401_v34  ;;  %948 = vmatprep.mubr.bf16.mxu0 %v4708_v1 }
 0x11c   :  { %1165 = vmatprep.subr.bf16.mxu0 %v4406_v37 }
 0x11f   :  { %1166 = vmatpush1.bf16.msra.mxu0 %v4404_v38 }
 0x122   :  { %3625 = vmatmul.mubr.msk.bf16.gmra.mrb[4].mxu0 %vm167_vm1, %v4860_v30  ;;  %v4407_v30 = vld [vmem:[%s5981_s3] sm:$0xff]  }
 0x123   :  { %958 = vmatprep.mubr.bf16.mxu0 %v4708_v1  ;;  %1669 = vmatpush1.bf16.msra.mxu1 %v4407_v30 }
 0x124   :  { %1670 = vmatprep.subr.bf16.mxu1 %v4708_v1 }
 0x127   :  { %1671 = vmatpush1.bf16.msra.mxu1 %v4408_v39 }
 0x128   :  { %1672 = vmatprep.subr.bf16.mxu1 %v4708_v1 }
 0x12a   :  { %3626 = vmatmul.mubr.msk.bf16.gmra.mrb[8].mxu0 %vm167_vm1, %v4875_v35  ;;  %v76_v35 = vld [vmem:[%s5980_s0 + $0xf8] sm:$0xff] }
 0x12b   :  { %968 = vmatprep.mubr.bf16.mxu0 %v4708_v1  ;;  %1673 = vmatpush1.bf16.msra.mxu1 %v4409_v42 }
 0x12c   :  { %1674 = vmatprep.subr.bf16.mxu1 %v4708_v1 }
 0x12f   :  { %1675 = vmatpush1.bf16.msra.mxu1 %v4410_v44 }
 0x130   :  { %1676 = vmatprep.subr.bf16.mxu1 %v4708_v1 }
 0x132   :  { %3627 = vmatmul.mubr.msk.bf16.gmra.mrb[12].mxu0 %vm167_vm1, %v4890_v40  ;;  %v92_v40 = vpack.c.bf16 %v76_v35, %v75_v25 }
 0x133   :  { %978 = vmatprep.mubr.bf16.mxu0 %v4708_v1 }
 0x13a   :  { %3628 = vmatmul.mubr.msk.bf16.gmra.mrb[16].mxu0 %vm167_vm1, %v4901_v43  ;;  %v881_v43 = vrot.slane %v92_v40, 4 }
 0x13b   :  { %988 = vmatprep.mubr.bf16.mxu0 %v4708_v1 }
 0x13c   :  { %v882_v45 = vsel %vm117_vm0, %v145_v32, %v881_v43 }
 0x142   :  { %3629 = vmatmul.mubr.msk.bf16.gmra.mrb[20].mxu0 %vm167_vm1, %v5040_v11 }
 0x143   :  { %998 = vmatprep.mubr.bf16.mxu0 %v4708_v1 }
 0x14a   :  { %3630 = vmatmul.mubr.msk.bf16.gmra.mrb[24].mxu0 %vm167_vm1, %v5050_v13 }
 0x14b   :  { %1008 = vmatprep.mubr.bf16.mxu0 %v4708_v1 }
 0x152   :  { %3631 = vmatmul.mubr.msk.bf16.gmra.mrb[28].mxu0 %vm167_vm1, %v5060_v15 }
 0x153   :  { %1018 = vmatprep.mubr.bf16.mxu0 %v4708_v1 }
 0x15a   :  { %3632 = vmatmul.mubr.msk.bf16.gmra.mrb[32].mxu0 %vm167_vm1, %v138_v18 }
 0x15b   :  { %1028 = vmatprep.mubr.bf16.mxu0 %v4708_v1 }
 0x162   :  { %3633 = vmatmul.mubr.msk.bf16.gmra.mrb[36].mxu0 %vm167_vm1, %v140_v20  ;;  %v5319_v20 = vshrl.u32 %v1394_v19, 7 }
 0x163   :  { %1038 = vmatprep.mubr.bf16.mxu0 %v4708_v1 }
 0x164   :  { %v1396_v21 = vsub.s32 0, %v5319_v20  ;;  %v1400_v23 = vsub.s32 1, %v5319_v20 }
 0x16a   :  { %3634 = vmatmul.mubr.msk.bf16.gmra.mrb[40].mxu0 %vm167_vm1, %v142_v22  ;;  %v1392_v22 = vld [vmem:[%s5982_s2] sm:$0x3] }
 0x16b   :  { %1048 = vmatprep.mubr.bf16.mxu0 %v4708_v1  ;;  %v5332_v27 = vrot.slane %v1392_v22, %v1400_v23 }
 0x172   :  { %3635 = vmatmul.mubr.msk.bf16.gmra.mrb[44].mxu0 %vm167_vm1, %v144_v24  ;;  %v5328_v24 = vrot.slane %v1392_v22, %v1396_v21 }
 0x173   :  { %1058 = vmatprep.mubr.bf16.mxu0 %v4708_v1 }
 0x17a   :  { %3636 = vmatmul.mubr.msk.bf16.gmra.mrb[48].mxu0 %vm167_vm1, %v146_v33 }
 0x17b   :  { %1068 = vmatprep.mubr.bf16.mxu0 %v4708_v1 }
 0x180   :  { %v5255_v49 = vpop.f32.mrb[0].mxu1 }
 0x182   :  { %3637 = vmatmul.mubr.msk.bf16.gmra.mrb[52].mxu0 %vm167_vm1, %v882_v45 }
 0x183   :  { %1195 = vmatprep.mubr.bf16.mxu0 %v4708_v1 }
 0x18a   :  { %3646 = vmatmul.mubr.msk.bf16.vlgmr.msra.gmra.mrb[0].mxu0 %vm167_vm1, %v4822_v17  ;;  %v4411_v17 = vld [vmem:[%s5981_s3 + $0x20] sm:$0xff]  }
 0x18b   :  { %1205 = vmatprep.mubr.bf16.mxu0 %v4708_v1  ;;  %1677 = vmatpush1.bf16.msra.mxu1 %v4411_v17 }
 0x18c   :  { %1678 = vmatprep.subr.bf16.mxu1 %v4708_v1 }
 0x192   :  { %3647 = vmatmul.mubr.msk.bf16.gmra.mrb[4].mxu0 %vm167_vm1, %v4847_v26  ;;  %v4412_v26 = vld [vmem:[%s5981_s3 + $0x28] sm:$0xff]  }
 0x193   :  { %1215 = vmatprep.mubr.bf16.mxu0 %v4708_v1  ;;  %1679 = vmatpush1.bf16.msra.mxu1 %v4412_v26 }
 0x194   :  { %1680 = vmatprep.subr.bf16.mxu1 %v4708_v1 }
 0x19a   :  { %3648 = vmatmul.mubr.msk.bf16.gmra.mrb[8].mxu0 %vm167_vm1, %v4862_v31  ;;  %v4413_v31 = vld [vmem:[%s5981_s3 + $0x30] sm:$0xff]  }
 0x19b   :  { %1225 = vmatprep.mubr.bf16.mxu0 %v4708_v1  ;;  %1681 = vmatpush1.bf16.msra.mxu1 %v4413_v31 }
 0x19c   :  { %1682 = vmatprep.subr.bf16.mxu1 %v4708_v1 }
 0x1a2   :  { %3649 = vmatmul.mubr.msk.bf16.gmra.mrb[12].mxu0 %vm167_vm1, %v4877_v36  ;;  %v4414_v36 = vld [vmem:[%s5981_s3 + $0x38] sm:$0xff]  }
 0x1a3   :  { %1235 = vmatprep.mubr.bf16.mxu0 %v4708_v1  ;;  %1683 = vmatpush1.bf16.msra.mxu1 %v4414_v36 }
 0x1a4   :  { %1684 = vmatprep.subr.bf16.mxu1 %v4708_v1 }
 0x1aa   :  { %3650 = vmatmul.mubr.msk.bf16.gmra.mrb[16].mxu0 %vm167_vm1, %v4892_v41  ;;  %v4415_v41 = vld [vmem:[%s5981_s3 + $0x40] sm:$0xff]  }
 0x1ab   :  { %1245 = vmatprep.mubr.bf16.mxu0 %v4708_v1  ;;  %1685 = vmatpush1.bf16.msra.mxu1 %v4415_v41 }
 0x1ac   :  { %1686 = vmatprep.subr.bf16.mxu1 %v4708_v1 }
 0x1af   :  { %1687 = vmatpush1.bf16.msra.mxu1 %v4416_v46 }
 0x1b0   :  { %1688 = vmatprep.subr.bf16.mxu1 %v4708_v1 }
 0x1b2   :  { %3651 = vmatmul.mubr.msk.bf16.gmra.mrb[20].mxu0 %vm167_vm1, %v4944_v50  ;;  %v5257_v50 = vpop.f32.mrb[1].mxu1 }
 0x1b3   :  { %1255 = vmatprep.mubr.bf16.mxu0 %v4708_v1  ;;  %1689 = vmatpush1.bf16.msra.mxu1 %v1666_v48  ;;  %v5259_v51 = vpop.f32.mrb[2].mxu1 }
 0x1b4   :  { %v5261_v52 = vpop.f32.mrb[3].mxu1 }
 0x1ba   :  { %3652 = vmatmul.mubr.msk.bf16.gmra.mrb[24].mxu0 %vm167_vm1, %v4955_v53  ;;  %v5263_v53 = vpop.f32.mrb[4].mxu1 }
 0x1bb   :  { %1265 = vmatprep.mubr.bf16.mxu0 %v4708_v1  ;;  %v5265_v54 = vpop.f32.mrb[5].mxu1 }
 0x1bc   :  { %v5267_v55 = vpop.f32.mrb[6].mxu1 }
 0x1c2   :  { %3653 = vmatmul.mubr.msk.bf16.gmra.mrb[28].mxu0 %vm167_vm1, %v4966_v56  ;;  %v5269_v56 = vpop.f32.mrb[7].mxu1 }
 0x1c3   :  { %1275 = vmatprep.mubr.bf16.mxu0 %v4708_v1  ;;  %v5271_v57 = vpop.f32.mrb[8].mxu1 }
 0x1c4   :  { %v5273_v58 = vpop.f32.mrb[9].mxu1 }
 0x1ca   :  { %3654 = vmatmul.mubr.msk.bf16.gmra.mrb[32].mxu0 %vm167_vm1, %v4977_v59  ;;  %v5275_v59 = vpop.f32.mrb[10].mxu1 }
 0x1cb   :  { %1285 = vmatprep.mubr.bf16.mxu0 %v4708_v1  ;;  %v5277_v60 = vpop.f32.mrb[11].mxu1 }
 0x1cc   :  { %v5279_v61 = vpop.f32.mrb[12].mxu1 }
 0x1d2   :  { %3655 = vmatmul.mubr.msk.bf16.gmra.mrb[36].mxu0 %vm167_vm1, %v4988_v62  ;;  %v5281_v62 = vpop.f32.mrb[13].mxu1 }
 0x1d3   :  { %1295 = vmatprep.mubr.bf16.mxu0 %v4708_v1  ;;  %v5283_v63 = vpop.f32.mrb[14].mxu1 }
 0x1d4   :  { %v5285_v0 = vpop.f32.mrb[15].mxu1 }
 0x1da   :  { %3656 = vmatmul.mubr.msk.bf16.gmra.mrb[40].mxu0 %vm167_vm1, %v4999_v2  ;;  %v5287_v2 = vpop.f32.mrb[16].mxu1 }
 0x1db   :  { %1305 = vmatprep.mubr.bf16.mxu0 %v4708_v1  ;;  %v5289_v3 = vpop.f32.mrb[17].mxu1 }
 0x1dc   :  { %v5291_v4 = vpop.f32.mrb[18].mxu1 }
 0x1e2   :  { %3657 = vmatmul.mubr.msk.bf16.gmra.mrb[44].mxu0 %vm167_vm1, %v5010_v5  ;;  %v5293_v5 = vpop.f32.mrb[19].mxu1 }
 0x1e3   :  { %1315 = vmatprep.mubr.bf16.mxu0 %v4708_v1  ;;  %v5295_v6 = vpop.f32.mrb[20].mxu1 }
 0x1e4   :  { %v5297_v7 = vpop.f32.mrb[21].mxu1 }
 0x1e5   :  { %v5299_v8 = vpop.f32.mrb[22].mxu1 }
 0x1e6   :  { %v5301_v9 = vpop.f32.mrb[23].mxu1 }
 0x1e7   :  { %v5303_v10 = vpop.f32.mrb[24].mxu1 }
 0x1e8   :  { %v5305_v11 = vpop.f32.mrb[25].mxu1 }
 0x1e9   :  { %v5307_v12 = vpop.f32.mrb[26].mxu1 }
 0x1ea   :  { %3658 = vmatmul.mubr.msk.bf16.gmra.mrb[48].mxu0 %vm167_vm1, %v5099_v29  ;;  %v5309_v13 = vpop.f32.mrb[27].mxu1 }
 0x1eb   :  { %1325 = vmatprep.mubr.bf16.mxu0 %v4708_v1  ;;  %v5311_v14 = vpop.f32.mrb[28].mxu1 }
 0x1ec   :  { %v5313_v15 = vpop.f32.mrb[29].mxu1 }
 0x1ed   :  { %v5315_v16 = vpop.f32.mrb[30].mxu1 }
 0x1ee   :  { %v5317_v18 = vpop.f32.mrb[31].mxu1 }
 0x1f2   :  { %3659 = vmatmul.mubr.msk.bf16.gmra.mrb[52].mxu0 %vm167_vm1, %v92_v40 }
 0x25d   :  { %v1197_v28 = vpop.f32.mrb[0].mxu0 }
 0x25e   :  { %v1404_v29 = vadd.f32 %v5328_v24, %v1197_v28  ;;  %v1199_v32 = vpop.f32.mrb[1].mxu0 }
 0x25f   :  { %v1405_v33 = vadd.f32 %v5332_v27, %v1199_v32  ;;  %v1201_v34 = vpop.f32.mrb[2].mxu0 }
 0x260   :  { %4552 = vtanh.f32 %v1404_v29  ;;  %v1406_v37 = vadd.f32 %v5328_v24, %v1201_v34  ;;  %v1203_v38 = vpop.f32.mrb[3].mxu0 }
 0x261   :  { %4554 = vtanh.f32 %v1405_v33  ;;  %v1407_v25 = vadd.f32 %v5332_v27, %v1203_v38 }
 0x262   :  { %4556 = vtanh.f32 %v1406_v37 }
 0x263   :  { %4558 = vtanh.f32 %v1407_v25 }
 0x265   :  { %v1207_v30 = vpop.f32.mrb[4].mxu0 }
 0x266   :  { %v1408_v35 = vadd.f32 %v5328_v24, %v1207_v30  ;;  %v1209_v39 = vpop.f32.mrb[5].mxu0 }
 0x267   :  { %v1409_v40 = vadd.f32 %v5332_v27, %v1209_v39  ;;  %v1211_v42 = vpop.f32.mrb[6].mxu0 }
 0x268   :  { %4560 = vtanh.f32 %v1408_v35  ;;  %v1410_v43 = vadd.f32 %v5328_v24, %v1211_v42  ;;  %v1213_v44 = vpop.f32.mrb[7].mxu0 }
 0x269   :  { %4562 = vtanh.f32 %v1409_v40  ;;  %v1411_v45 = vadd.f32 %v5332_v27, %v1213_v44 }
 0x26a   :  { %v4553_v17 = vpop.eup %4552  ;;  %4564 = vtanh.f32 %v1410_v43 }
 0x26b   :  { %v4555_v26 = vpop.eup %4554  ;;  %4566 = vtanh.f32 %v1411_v45 }
 0x26c   :  { %v4557_v31 = vpop.eup %4556 }
 0x26d   :  { %v4559_v36 = vpop.eup %4558  ;;  %v1516_v41 = vadd.f32 %v4557_v31, %v4553_v17  ;;  %v1217_v46 = vpop.f32.mrb[8].mxu0 }
 0x26e   :  { %v1412_v47 = vadd.f32 %v5328_v24, %v1217_v46  ;;  %v1219_v48 = vpop.f32.mrb[9].mxu0  ;;  %v1517_v19 = vadd.f32 %v4559_v36, %v4555_v26 }
 0x26f   :  { %v1413_v22 = vadd.f32 %v5332_v27, %v1219_v48  ;;  %v1221_v28 = vpop.f32.mrb[10].mxu0 }
 0x270   :  { %4568 = vtanh.f32 %v1412_v47  ;;  %v1414_v29 = vadd.f32 %v5328_v24, %v1221_v28  ;;  %v1223_v32 = vpop.f32.mrb[11].mxu0 }
 0x271   :  { %4570 = vtanh.f32 %v1413_v22  ;;  %v1415_v33 = vadd.f32 %v5332_v27, %v1223_v32 }
 0x272   :  { %v4561_v34 = vpop.eup %4560  ;;  %4572 = vtanh.f32 %v1414_v29 }
 0x273   :  { %v4563_v37 = vpop.eup %4562  ;;  %4574 = vtanh.f32 %v1415_v33 }
 0x274   :  { %v4565_v38 = vpop.eup %4564 }
 0x275   :  { %v4567_v25 = vpop.eup %4566  ;;  %v1518_v30 = vadd.f32 %v4565_v38, %v4561_v34  ;;  %v1227_v35 = vpop.f32.mrb[12].mxu0 }
 0x276   :  { %v1416_v39 = vadd.f32 %v5328_v24, %v1227_v35  ;;  %v1229_v40 = vpop.f32.mrb[13].mxu0  ;;  %v1519_v42 = vadd.f32 %v4567_v25, %v4563_v37 }
 0x277   :  { %v1417_v43 = vadd.f32 %v5332_v27, %v1229_v40  ;;  %v1231_v44 = vpop.f32.mrb[14].mxu0  ;;  %v1544_v45 = vpack.c.bf16 %v1518_v30, %v1516_v41 }
 0x278   :  { %4576 = vtanh.f32 %v1416_v39  ;;  %v1418_v17 = vadd.f32 %v5328_v24, %v1231_v44  ;;  %v1233_v26 = vpop.f32.mrb[15].mxu0  ;;  %v1545_v31 = vpack.c.bf16 %v1519_v42, %v1517_v19 }
 0x279   :  { %4578 = vtanh.f32 %v1417_v43  ;;  %v1419_v36 = vadd.f32 %v5332_v27, %v1233_v26 }
 0x27a   :  { %v4569_v46 = vpop.eup %4568  ;;  %4580 = vtanh.f32 %v1418_v17  ;;  %3671 = vmatprep.mubr.msk.bf16.mxu1 %vm1642_vm2, %v1545_v31 }
 0x27b   :  { %v4571_v47 = vpop.eup %4570  ;;  %4582 = vtanh.f32 %v1419_v36  ;;  %1701 = vmatmul.mubr.bf16.vlgmr.msra.gmra.mrb[32].mxu1 %v1544_v45 }
 0x27c   :  { %v4573_v48 = vpop.eup %4572 }
 0x27d   :  { %v4575_v22 = vpop.eup %4574  ;;  %v1237_v28 = vpop.f32.mrb[16].mxu0  ;;  %v1520_v29 = vadd.f32 %v4573_v48, %v4569_v46 }
 0x27e   :  { %v1420_v41 = vadd.f32 %v5328_v24, %v1237_v28  ;;  %v1239_v32 = vpop.f32.mrb[17].mxu0  ;;  %v1521_v33 = vadd.f32 %v4575_v22, %v4571_v47 }
 0x27f   :  { %v1421_v19 = vadd.f32 %v5332_v27, %v1239_v32  ;;  %v1241_v34 = vpop.f32.mrb[18].mxu0 }
 0x280   :  { %4584 = vtanh.f32 %v1420_v41  ;;  %v1422_v37 = vadd.f32 %v5328_v24, %v1241_v34  ;;  %v1243_v38 = vpop.f32.mrb[19].mxu0 }
 0x281   :  { %4586 = vtanh.f32 %v1421_v19  ;;  %v1423_v25 = vadd.f32 %v5332_v27, %v1243_v38 }
 0x282   :  { %v4577_v30 = vpop.eup %4576  ;;  %4588 = vtanh.f32 %v1422_v37 }
 0x283   :  { %v4579_v35 = vpop.eup %4578  ;;  %4590 = vtanh.f32 %v1423_v25 }
 0x284   :  { %v4581_v39 = vpop.eup %4580 }
 0x285   :  { %v4583_v40 = vpop.eup %4582  ;;  %v1247_v42 = vpop.f32.mrb[20].mxu0  ;;  %v1522_v43 = vadd.f32 %v4581_v39, %v4577_v30 }
 0x286   :  { %v1424_v44 = vadd.f32 %v5328_v24, %v1247_v42  ;;  %v1249_v45 = vpop.f32.mrb[21].mxu0  ;;  %v1523_v17 = vadd.f32 %v4583_v40, %v4579_v35 }
 0x287   :  { %v1425_v26 = vadd.f32 %v5332_v27, %v1249_v45  ;;  %v1251_v31 = vpop.f32.mrb[22].mxu0  ;;  %v1546_v36 = vpack.c.bf16 %v1522_v43, %v1520_v29 }
 0x288   :  { %4592 = vtanh.f32 %v1424_v44  ;;  %v1426_v46 = vadd.f32 %v5328_v24, %v1251_v31  ;;  %v1253_v47 = vpop.f32.mrb[23].mxu0  ;;  %v1547_v48 = vpack.c.bf16 %v1523_v17, %v1521_v33 }
 0x289   :  { %4594 = vtanh.f32 %v1425_v26  ;;  %v1427_v22 = vadd.f32 %v5332_v27, %v1253_v47 }
 0x28a   :  { %v4585_v28 = vpop.eup %4584  ;;  %4596 = vtanh.f32 %v1426_v46  ;;  %3672 = vmatprep.mubr.msk.bf16.mxu1 %vm1642_vm2, %v1547_v48 }
 0x28b   :  { %v4587_v41 = vpop.eup %4586  ;;  %4598 = vtanh.f32 %v1427_v22  ;;  %1709 = vmatmul.mubr.bf16.gmra.mrb[36].mxu1 %v1546_v36 }
 0x28c   :  { %v4589_v32 = vpop.eup %4588 }
 0x28d   :  { %v4591_v19 = vpop.eup %4590  ;;  %v1257_v34 = vpop.f32.mrb[24].mxu0  ;;  %v1524_v37 = vadd.f32 %v4589_v32, %v4585_v28 }
 0x28e   :  { %v4070_v29 = vadd.f32 %v1257_v34, %v5255_v49  ;;  %v1259_v38 = vpop.f32.mrb[25].mxu0  ;;  %v1525_v25 = vadd.f32 %v4591_v19, %v4587_v41 }
 0x28f   :  { %v4071_v33 = vadd.f32 %v1259_v38, %v5257_v50  ;;  %v1261_v30 = vpop.f32.mrb[26].mxu0 }
 0x290   :  { %v1428_v35 = vadd.f32 %v4070_v29, %v5328_v24  ;;  %v4072_v39 = vadd.f32 %v1261_v30, %v5259_v51  ;;  %v1263_v40 = vpop.f32.mrb[27].mxu0 }
 0x291   :  { %v1429_v42 = vadd.f32 %v4071_v33, %v5332_v27  ;;  %v4073_v43 = vadd.f32 %v1263_v40, %v5261_v52 }
 0x292   :  { %v4593_v44 = vpop.eup %4592  ;;  %4600 = vtanh.f32 %v1428_v35  ;;  %v1430_v45 = vadd.f32 %v4072_v39, %v5328_v24 }
 0x293   :  { %v4595_v17 = vpop.eup %4594  ;;  %4602 = vtanh.f32 %v1429_v42  ;;  %v1431_v49 = vadd.f32 %v4073_v43, %v5332_v27 }
 0x294   :  { %v4597_v26 = vpop.eup %4596  ;;  %4604 = vtanh.f32 %v1430_v45 }
 0x295   :  { %v4599_v50 = vpop.eup %4598  ;;  %4606 = vtanh.f32 %v1431_v49  ;;  %v1267_v31 = vpop.f32.mrb[28].mxu0  ;;  %v1526_v36 = vadd.f32 %v4597_v26, %v4593_v44 }
 0x296   :  { %v4074_v51 = vadd.f32 %v1267_v31, %v5263_v53  ;;  %v1269_v46 = vpop.f32.mrb[29].mxu0  ;;  %v1527_v47 = vadd.f32 %v4599_v50, %v4595_v17 }
 0x297   :  { %v4075_v52 = vadd.f32 %v1269_v46, %v5265_v54  ;;  %v1271_v48 = vpop.f32.mrb[30].mxu0  ;;  %v1548_v22 = vpack.c.bf16 %v1526_v36, %v1524_v37 }
 0x298   :  { %v1432_v28 = vadd.f32 %v4074_v51, %v5328_v24  ;;  %v4076_v41 = vadd.f32 %v1271_v48, %v5267_v55  ;;  %v1273_v32 = vpop.f32.mrb[31].mxu0  ;;  %v1549_v19 = vpack.c.bf16 %v1527_v47, %v1525_v25 }
 0x299   :  { %v1433_v34 = vadd.f32 %v4075_v52, %v5332_v27  ;;  %v4077_v29 = vadd.f32 %v1273_v32, %v5269_v56 }
 0x29a   :  { %4608 = vtanh.f32 %v1432_v28  ;;  %v1434_v38 = vadd.f32 %v4076_v41, %v5328_v24  ;;  %3673 = vmatprep.mubr.msk.bf16.mxu1 %vm1642_vm2, %v1549_v19 }
 0x29b   :  { %4610 = vtanh.f32 %v1433_v34  ;;  %v1435_v53 = vadd.f32 %v4077_v29, %v5332_v27  ;;  %1717 = vmatmul.mubr.bf16.gmra.mrb[40].mxu1 %v1548_v22 }
 0x29c   :  { %v4601_v54 = vpop.eup %4600  ;;  %4612 = vtanh.f32 %v1434_v38 }
 0x29d   :  { %v4603_v37 = vpop.eup %4602  ;;  %4614 = vtanh.f32 %v1435_v53  ;;  %v1277_v55 = vpop.f32.mrb[32].mxu0 }
 0x29e   :  { %v4605_v33 = vpop.eup %4604  ;;  %v4078_v25 = vadd.f32 %v1277_v55, %v5271_v57  ;;  %v1279_v30 = vpop.f32.mrb[33].mxu0 }
 0x29f   :  { %v4607_v35 = vpop.eup %4606  ;;  %v4079_v56 = vadd.f32 %v1279_v30, %v5273_v58  ;;  %v1281_v39 = vpop.f32.mrb[34].mxu0  ;;  %v1528_v40 = vadd.f32 %v4605_v33, %v4601_v54 }
 0x2a0   :  { %v1436_v42 = vadd.f32 %v4078_v25, %v5328_v24  ;;  %v4080_v43 = vadd.f32 %v1281_v39, %v5275_v59  ;;  %v1283_v44 = vpop.f32.mrb[35].mxu0  ;;  %v1529_v45 = vadd.f32 %v4607_v35, %v4603_v37 }
 0x2a1   :  { %v1437_v17 = vadd.f32 %v4079_v56, %v5332_v27  ;;  %v4081_v49 = vadd.f32 %v1283_v44, %v5277_v60 }
 0x2a2   :  { %4616 = vtanh.f32 %v1436_v42  ;;  %v1438_v26 = vadd.f32 %v4080_v43, %v5328_v24 }
 0x2a3   :  { %4618 = vtanh.f32 %v1437_v17  ;;  %v1439_v57 = vadd.f32 %v4081_v49, %v5332_v27 }
 0x2a4   :  { %v4609_v50 = vpop.eup %4608  ;;  %4620 = vtanh.f32 %v1438_v26 }
 0x2a5   :  { %v4611_v58 = vpop.eup %4610  ;;  %4622 = vtanh.f32 %v1439_v57  ;;  %v1287_v31 = vpop.f32.mrb[36].mxu0 }
 0x2a6   :  { %v4613_v36 = vpop.eup %4612  ;;  %v4082_v59 = vadd.f32 %v1287_v31, %v5279_v61  ;;  %v1289_v51 = vpop.f32.mrb[37].mxu0 }
 0x2a7   :  { %v4615_v46 = vpop.eup %4614  ;;  %v4083_v47 = vadd.f32 %v1289_v51, %v5281_v62  ;;  %v1291_v52 = vpop.f32.mrb[38].mxu0  ;;  %v1530_v60 = vadd.f32 %v4613_v36, %v4609_v50 }
 0x2a8   :  { %v1440_v48 = vadd.f32 %v4082_v59, %v5328_v24  ;;  %v4084_v22 = vadd.f32 %v1291_v52, %v5283_v63  ;;  %v1293_v28 = vpop.f32.mrb[39].mxu0  ;;  %v1531_v41 = vadd.f32 %v4615_v46, %v4611_v58 }
 0x2a9   :  { %v1441_v32 = vadd.f32 %v4083_v47, %v5332_v27  ;;  %v4085_v19 = vadd.f32 %v1293_v28, %v5285_v0  ;;  %v1550_v34 = vpack.c.bf16 %v1530_v60, %v1528_v40 }
 0x2aa   :  { %4624 = vtanh.f32 %v1440_v48  ;;  %v1442_v61 = vadd.f32 %v4084_v22, %v5328_v24  ;;  %v1551_v29 = vpack.c.bf16 %v1531_v41, %v1529_v45 }
 0x2ab   :  { %4626 = vtanh.f32 %v1441_v32  ;;  %v1443_v62 = vadd.f32 %v4085_v19, %v5332_v27 }
 0x2ac   :  { %v4617_v38 = vpop.eup %4616  ;;  %4628 = vtanh.f32 %v1442_v61  ;;  %3674 = vmatprep.mubr.msk.bf16.mxu1 %vm1642_vm2, %v1551_v29 }
 0x2ad   :  { %v4619_v53 = vpop.eup %4618  ;;  %4630 = vtanh.f32 %v1443_v62  ;;  %v1297_v63 = vpop.f32.mrb[40].mxu0  ;;  %1725 = vmatmul.mubr.bf16.gmra.mrb[44].mxu1 %v1550_v34 }
 0x2ae   :  { %v4621_v54 = vpop.eup %4620  ;;  %v4086_v37 = vadd.f32 %v1297_v63, %v5287_v2  ;;  %v1299_v0 = vpop.f32.mrb[41].mxu0 }
 0x2af   :  { %v4623_v55 = vpop.eup %4622  ;;  %v4087_v33 = vadd.f32 %v1299_v0, %v5289_v3  ;;  %v1301_v25 = vpop.f32.mrb[42].mxu0  ;;  %v1532_v30 = vadd.f32 %v4621_v54, %v4617_v38 }
 0x2b0   :  { %v1444_v35 = vadd.f32 %v4086_v37, %v5328_v24  ;;  %v4088_v56 = vadd.f32 %v1301_v25, %v5291_v4  ;;  %v1303_v39 = vpop.f32.mrb[43].mxu0  ;;  %v1533_v40 = vadd.f32 %v4623_v55, %v4619_v53 }
 0x2b1   :  { %v1445_v42 = vadd.f32 %v4087_v33, %v5332_v27  ;;  %v4089_v43 = vadd.f32 %v1303_v39, %v5293_v5 }
 0x2b2   :  { %4632 = vtanh.f32 %v1444_v35  ;;  %v1446_v44 = vadd.f32 %v4088_v56, %v5328_v24 }
 0x2b3   :  { %4634 = vtanh.f32 %v1445_v42  ;;  %v1447_v2 = vadd.f32 %v4089_v43, %v5332_v27 }
 0x2b4   :  { %v4625_v45 = vpop.eup %4624  ;;  %4636 = vtanh.f32 %v1446_v44 }
 0x2b5   :  { %v4627_v3 = vpop.eup %4626  ;;  %4638 = vtanh.f32 %v1447_v2  ;;  %v1307_v17 = vpop.f32.mrb[44].mxu0 }
 0x2b6   :  { %v4629_v49 = vpop.eup %4628  ;;  %v4090_v4 = vadd.f32 %v1307_v17, %v5295_v6  ;;  %v1309_v26 = vpop.f32.mrb[45].mxu0 }
 0x2b7   :  { %v4631_v57 = vpop.eup %4630  ;;  %v4091_v50 = vadd.f32 %v1309_v26, %v5297_v7  ;;  %v1311_v58 = vpop.f32.mrb[46].mxu0  ;;  %v1534_v5 = vadd.f32 %v4629_v49, %v4625_v45 }
 0x2b8   :  { %v1448_v31 = vadd.f32 %v4090_v4, %v5328_v24  ;;  %v4092_v36 = vadd.f32 %v1311_v58, %v5299_v8  ;;  %v1313_v59 = vpop.f32.mrb[47].mxu0  ;;  %v1535_v51 = vadd.f32 %v4631_v57, %v4627_v3 }
 0x2b9   :  { %v1449_v46 = vadd.f32 %v4091_v50, %v5332_v27  ;;  %v4093_v47 = vadd.f32 %v1313_v59, %v5301_v9  ;;  %v1552_v52 = vpack.c.bf16 %v1534_v5, %v1532_v30  ;;  %v4421_v50 = vld [vmem:[%s5983_s4 + $0x68] ss:$8 sps:$4 sm:$0xff]  }
 0x2ba   :  { %4640 = vtanh.f32 %v1448_v31  ;;  %v1450_v6 = vadd.f32 %v4092_v36, %v5328_v24  ;;  %v1553_v60 = vpack.c.bf16 %v1535_v51, %v1533_v40  ;;  %v4424_v31 = vld [vmem:[%s5983_s4 + $0x78] ss:$8 sps:$4 sm:$0xff]   ;;  %v4426_v36 = vld [vmem:[%s5983_s4 + $0x7c] ss:$8 sps:$4 sm:$0xff]   ;;  %v4429_v51 = vld [vmem:[%s5983_s4 + $0x8c] ss:$8 sps:$4 sm:$0xff]  }
 0x2bb   :  { %4642 = vtanh.f32 %v1449_v46  ;;  %v1451_v7 = vadd.f32 %v4093_v47, %v5332_v27 }
 0x2bc   :  { %v4633_v48 = vpop.eup %4632  ;;  %4644 = vtanh.f32 %v1450_v6  ;;  %3675 = vmatprep.mubr.msk.bf16.mxu1 %vm1642_vm2, %v1553_v60  ;;  %v4427_v6 = vld [vmem:[%s5983_s4 + $0x88] ss:$8 sps:$4 sm:$0xff]  }
 0x2bd   :  { %v4635_v22 = vpop.eup %4634  ;;  %4646 = vtanh.f32 %v1451_v7  ;;  %v1317_v8 = vpop.f32.mrb[48].mxu0  ;;  %1733 = vmatmul.mubr.bf16.gmra.mrb[48].mxu1 %v1552_v52 }
 0x2be   :  { %v4637_v28 = vpop.eup %4636  ;;  %v4094_v41 = vadd.f32 %v1317_v8, %v5303_v10  ;;  %v1319_v9 = vpop.f32.mrb[49].mxu0  ;;  %v3688_v8 = vld [vmem:[%s5983_s4 + $0xa8] sm:$0x33] }
 0x2bf   :  { %v4639_v32 = vpop.eup %4638  ;;  %v4095_v19 = vadd.f32 %v1319_v9, %v5305_v11  ;;  %v1321_v34 = vpop.f32.mrb[50].mxu0  ;;  %v1536_v61 = vadd.f32 %v4637_v28, %v4633_v48  ;;  %v4432_v48 = vld [vmem:[%s5983_s4 + $0x9c] ss:$8 sps:$4 sm:$0xff]   ;;  %v3700_v28 = vcombine.high %v3688_v8, %v3688_v8 }
 0x2c0   :  { %v1452_v29 = vadd.f32 %v4094_v41, %v5328_v24  ;;  %v4096_v62 = vadd.f32 %v1321_v34, %v5307_v12  ;;  %v1323_v38 = vpop.f32.mrb[51].mxu0  ;;  %v1537_v53 = vadd.f32 %v4639_v32, %v4635_v22  ;;  %v4430_v22 = vld [vmem:[%s5983_s4 + $0x98] ss:$8 sps:$4 sm:$0xff]   ;;  %v3699_v41 = vcombine.low %v3688_v8, %v3688_v8  ;;  %v4437_v32 = vld [vmem:[%s5983_s4 + $0x4] ss:$8 sps:$4 sm:$0xff]  }
 0x2c1   :  { %v1453_v63 = vadd.f32 %v4095_v19, %v5332_v27  ;;  %v4097_v54 = vadd.f32 %v1323_v38, %v5309_v13 }
 0x2c2   :  { %4648 = vtanh.f32 %v1452_v29  ;;  %v1454_v37 = vadd.f32 %v4096_v62, %v5328_v24  ;;  %v1891_v9 = vsel %vm1889_vm3, %v3699_v41, 0 }
 0x2c3   :  { %4650 = vtanh.f32 %v1453_v63  ;;  %v1455_v10 = vadd.f32 %v4097_v54, %v5332_v27 }
 0x2c4   :  { %v4641_v0 = vpop.eup %4640  ;;  %4652 = vtanh.f32 %v1454_v37 }
 0x2c5   :  { %v4643_v11 = vpop.eup %4642  ;;  %4654 = vtanh.f32 %v1455_v10  ;;  %v1327_v55 = vpop.f32.mrb[52].mxu0 }
 0x2c6   :  { %v4645_v33 = vpop.eup %4644  ;;  %v4098_v12 = vadd.f32 %v1327_v55, %v5311_v14  ;;  %v1329_v25 = vpop.f32.mrb[53].mxu0 }
 0x2c7   :  { %v4647_v30 = vpop.eup %4646  ;;  %v4099_v35 = vadd.f32 %v1329_v25, %v5313_v15  ;;  %v1331_v56 = vpop.f32.mrb[54].mxu0  ;;  %v1538_v13 = vadd.f32 %v4645_v33, %v4641_v0  ;;  %v4435_v25 = vld [vmem:[%s5983_s4] ss:$8 sps:$4 sm:$0xff]  }
 0x2c8   :  { %v1456_v39 = vadd.f32 %v4098_v12, %v5328_v24  ;;  %v4100_v40 = vadd.f32 %v1331_v56, %v5315_v16  ;;  %v1333_v42 = vpop.f32.mrb[55].mxu0  ;;  %v1539_v43 = vadd.f32 %v4647_v30, %v4643_v11  ;;  %v4440_v30 = vld [vmem:[%s5983_s4 + $0x14] ss:$8 sps:$4 sm:$0xff]   ;;  %v4438_v56 = vld [vmem:[%s5983_s4 + $0x10] ss:$8 sps:$4 sm:$0xff]  }
 0x2c9   :  { %v1457_v44 = vadd.f32 %v4099_v35, %v5332_v27  ;;  %v4101_v2 = vadd.f32 %v1333_v42, %v5317_v18  ;;  %v1554_v45 = vpack.c.bf16 %v1538_v13, %v1536_v61  ;;  %v4420_v18 = vld [vmem:[%s5983_s4 + $0x5c] ss:$8 sps:$4 sm:$0xff]  }
 0x2ca   :  { %4656 = vtanh.f32 %v1456_v39  ;;  %v1458_v14 = vadd.f32 %v4100_v40, %v5328_v24  ;;  %v1555_v3 = vpack.c.bf16 %v1539_v43, %v1537_v53  ;;  %v4418_v24 = vld [vmem:[%s5983_s4 + $0x58] ss:$8 sps:$4 sm:$0xff]   ;;  %1896 = vmatprep.subr.bf16.mxu1 %v4420_v18  ;;  %v4443_v13 = vld [vmem:[%s5983_s4 + $0x24] ss:$8 sps:$4 sm:$0xff]   ;;  %v4446_v42 = vld [vmem:[%s5983_s4 + $0x34] ss:$8 sps:$4 sm:$0xff]  }
 0x2cb   :  { %4658 = vtanh.f32 %v1457_v44  ;;  %v1459_v15 = vadd.f32 %v4101_v2, %v5332_v27  ;;  %1897 = vmatpush1.bf16.msra.mxu1 %v4418_v24  ;;  %v4423_v27 = vld [vmem:[%s5983_s4 + $0x6c] ss:$8 sps:$4 sm:$0xff]   ;;  %v4441_v39 = vld [vmem:[%s5983_s4 + $0x20] ss:$8 sps:$4 sm:$0xff]  }
 0x2cc   :  { %v4649_v17 = vpop.eup %4648  ;;  %4660 = vtanh.f32 %v1458_v14  ;;  %3676 = vmatprep.mubr.msk.bf16.mxu1 %vm1642_vm2, %v1555_v3  ;;  %1898 = vmatprep.subr.bf16.mxu1 %v4423_v27  ;;  %v4444_v3 = vld [vmem:[%s5983_s4 + $0x30] ss:$8 sps:$4 sm:$0xff]   ;;  %v4447_v18 = vld [vmem:[%s5983_s4 + $0x40] ss:$8 sps:$4 sm:$0xff]   ;;  %v4454_v27 = vld [vmem:[%s5983_s4 + $0xb4] ss:$8 sps:$4 sm:$0xff]  }
 0x2cd   :  { %v4651_v49 = vpop.eup %4650  ;;  %4662 = vtanh.f32 %v1459_v15  ;;  %1741 = vmatmul.mubr.bf16.gmra.mrb[52].mxu1 %v1554_v45  ;;  %v4449_v15 = vld [vmem:[%s5983_s4 + $0x44] ss:$8 sps:$4 sm:$0xff]  }
 0x2ce   :  { %v4653_v16 = vpop.eup %4652 }
 0x2cf   :  { %v4655_v4 = vpop.eup %4654  ;;  %v1540_v26 = vadd.f32 %v4653_v16, %v4649_v17  ;;  %1899 = vmatpush1.bf16.msra.mxu1 %v4421_v50 }
 0x2d0   :  { %v1541_v57 = vadd.f32 %v4655_v4, %v4651_v49  ;;  %1900 = vmatprep.subr.bf16.mxu1 %v4426_v36  ;;  %v1788_v49 = vld [vmem:[%s5983_s4 + $0x50] sm:$0x33] }
 0x2d1   :  { %v3718_v4 = vcombine.high %v1788_v49, %v1788_v49 }
 0x2d3   :  { %1901 = vmatpush1.bf16.msra.mxu1 %v4424_v31 }
 0x2d4   :  { %v4657_v58 = vpop.eup %4656  ;;  %1902 = vmatprep.subr.bf16.mxu1 %v4429_v51 }
 0x2d5   :  { %v4659_v5 = vpop.eup %4658 }
 0x2d6   :  { %v4661_v59 = vpop.eup %4660 }
 0x2d7   :  { %v4663_v46 = vpop.eup %4662  ;;  %v1542_v47 = vadd.f32 %v4661_v59, %v4657_v58  ;;  %1903 = vmatpush1.bf16.msra.mxu1 %v4427_v6 }
 0x2d8   :  { %v1543_v52 = vadd.f32 %v4663_v46, %v4659_v5  ;;  %1904 = vmatprep.subr.bf16.mxu1 %v4432_v48 }
 0x2d9   :  { %v1556_v60 = vpack.c.bf16 %v1542_v47, %v1540_v26  ;;  %v3717_v26 = vcombine.low %v1788_v49, %v1788_v49  ;;  %v4469_v49 = vld [vmem:[%s5983_s4 + $0x108] ss:$8 sps:$4 sm:$0xff]  }
 0x2da   :  { %v1557_v7 = vpack.c.bf16 %v1543_v52, %v1541_v57 }
 0x2db   :  { %1905 = vmatpush1.bf16.msra.mxu1 %v4430_v22  ;;  %v2050_v57 = vsel %vm1889_vm3, %v3717_v26, 0  ;;  %v4475_v26 = vld [vmem:[%s5983_s4 + $0x128] ss:$8 sps:$4 sm:$0xff]  }
 0x2dc   :  { %3677 = vmatprep.mubr.msk.bf16.mxu1 %vm1642_vm2, %v1557_v7  ;;  %3701 = vmatprep.subr.msk.bf16.mxu1 %vm1889_vm3, %v3700_v28 }
 0x2dd   :  { %1749 = vmatmul.mubr.bf16.gmra.mrb[56].mxu1 %v1556_v60 }
 0x2de   :  { %1928 = vmatprep.mubr.bf16.mxu1 %v4708_v1 }
 0x2df   :  { %1907 = vmatpush1.bf16.msra.mxu1 %v1891_v9 }
 0x2e0   :  { %2055 = vmatprep.subr.bf16.mxu1 %v4437_v32 }
 0x34e   :  { %v1702_v19 = vpop.f32.mrb[32].mxu1 }
 0x34f   :  { %v1704_v34 = vpop.f32.mrb[33].mxu1  ;;  %v1757_v29 = vmul.f32 0.25, %v1702_v19 }
 0x350   :  { %v1705_v61 = vpop.f32.mrb[34].mxu1 }
 0x351   :  { %v1758_v62 = vmul.f32 0.25, %v1705_v61  ;;  %v1707_v38 = vpop.f32.mrb[35].mxu1 }
 0x353   :  { %v5468_v53 = vpack.c.bf16 %v1758_v62, %v1757_v29 }
 0x355   :  { %v1807_v33 = vrot.slane %v5468_v53, 4 }
 0x35e   :  { %v1710_v63 = vpop.f32.mrb[36].mxu1 }
 0x35f   :  { %v1712_v54 = vpop.f32.mrb[37].mxu1  ;;  %v1759_v10 = vmul.f32 0.25, %v1710_v63 }
 0x360   :  { %v1713_v37 = vpop.f32.mrb[38].mxu1  ;;  %v4452_v54 = vld [vmem:[%s5983_s4 + $0xb0] ss:$8 sps:$4 sm:$0xff]  }
 0x361   :  { %v1760_v0 = vmul.f32 0.25, %v1713_v37  ;;  %v1715_v11 = vpop.f32.mrb[39].mxu1 }
 0x363   :  { %v5470_v55 = vpack.c.bf16 %v1760_v0, %v1759_v10  ;;  %v4457_v10 = vld [vmem:[%s5983_s4 + $0xc4] ss:$8 sps:$4 sm:$0xff]  }
 0x365   :  { %v1808_v12 = vrot.slane %v5470_v55, 4 }
 0x367   :  { %v1809_v35 = vsel %vm117_vm0, %v1807_v33, %v1808_v12 }
 0x368   :  { %3702 = vmatmul.mubr.msk.bf16.vlgmr.msra.gmra.mrb[60].mxu1 %vm1873_vm4, %v1809_v35  ;;  %v4460_v35 = vld [vmem:[%s5983_s4 + $0xd4] ss:$8 sps:$4 sm:$0xff]  }
 0x369   :  { %1938 = vmatprep.mubr.bf16.mxu1 %v4708_v1  ;;  %2056 = vmatpush1.bf16.msra.mxu1 %v4435_v25 }
 0x36a   :  { %2057 = vmatprep.subr.bf16.mxu1 %v4440_v30  ;;  %v4455_v30 = vld [vmem:[%s5983_s4 + $0xc0] ss:$8 sps:$4 sm:$0xff]  }
 0x36d   :  { %2058 = vmatpush1.bf16.msra.mxu1 %v4438_v56 }
 0x36e   :  { %v1718_v40 = vpop.f32.mrb[40].mxu1  ;;  %2059 = vmatprep.subr.bf16.mxu1 %v4443_v13 }
 0x36f   :  { %v1720_v43 = vpop.f32.mrb[41].mxu1  ;;  %v1761_v2 = vmul.f32 0.25, %v1718_v40 }
 0x370   :  { %v1721_v44 = vpop.f32.mrb[42].mxu1  ;;  %v4466_v43 = vld [vmem:[%s5983_s4 + $0xf4] ss:$8 sps:$4 sm:$0xff]  }
 0x371   :  { %v1762_v45 = vmul.f32 0.25, %v1721_v44  ;;  %v1723_v14 = vpop.f32.mrb[43].mxu1  ;;  %2060 = vmatpush1.bf16.msra.mxu1 %v4441_v39  ;;  %v4463_v39 = vld [vmem:[%s5983_s4 + $0xe4] ss:$8 sps:$4 sm:$0xff]  }
 0x372   :  { %2061 = vmatprep.subr.bf16.mxu1 %v4446_v42  ;;  %v4461_v42 = vld [vmem:[%s5983_s4 + $0xe0] ss:$8 sps:$4 sm:$0xff]  }
 0x373   :  { %v5501_v17 = vpack.c.bf16 %v1762_v45, %v1761_v2  ;;  %v3735_v44 = vld [vmem:[%s5983_s4 + $0x100] sm:$0x33]  ;;  %v4464_v2 = vld [vmem:[%s5983_s4 + $0xf0] ss:$8 sps:$4 sm:$0xff]  }
 0x374   :  { %v3747_v45 = vcombine.high %v3735_v44, %v3735_v44  ;;  %v3746_v14 = vcombine.low %v3735_v44, %v3735_v44 }
 0x375   :  { %v1810_v16 = vrot.slane %v5501_v17, 4  ;;  %2062 = vmatpush1.bf16.msra.mxu1 %v4444_v3 }
 0x376   :  { %2063 = vmatprep.subr.bf16.mxu1 %v4449_v15  ;;  %v2209_v3 = vsel %vm1889_vm3, %v3746_v14, 0  ;;  %v4471_v15 = vld [vmem:[%s5983_s4 + $0x10c] ss:$8 sps:$4 sm:$0xff]  }
 0x377   :  { %v5511_v24 = vsel %vm117_vm0, %v1808_v12, %v1810_v16 }
 0x378   :  { %3703 = vmatmul.mubr.msk.bf16.gmra.mrb[64].mxu1 %vm1873_vm4, %v5511_v24 }
 0x379   :  { %1948 = vmatprep.mubr.bf16.mxu1 %v4708_v1  ;;  %2064 = vmatpush1.bf16.msra.mxu1 %v4447_v18  ;;  %v4472_v18 = vld [vmem:[%s5983_s4 + $0x118] ss:$8 sps:$4 sm:$0xff]  }
 0x37a   :  { %3719 = vmatprep.subr.msk.bf16.mxu1 %vm1889_vm3, %v3718_v4  ;;  %v4477_v4 = vld [vmem:[%s5983_s4 + $0x12c] ss:$8 sps:$4 sm:$0xff]  }
 0x37d   :  { %2066 = vmatpush1.bf16.msra.mxu1 %v2050_v57  ;;  %v4478_v57 = vld [vmem:[%s5983_s4 + $0x138] ss:$8 sps:$4 sm:$0xff]  }
 0x37e   :  { %2214 = vmatprep.subr.bf16.mxu1 %v4454_v27  ;;  %v4483_v27 = vld [vmem:[%s5983_s4 + $0x14c] ss:$8 sps:$4 sm:$0xff]  }
 0x380   :  { %v1726_v50 = vpop.f32.mrb[44].mxu1 }
 0x381   :  { %v1728_v58 = vpop.f32.mrb[45].mxu1  ;;  %v1763_v31 = vmul.f32 0.25, %v1726_v50  ;;  %v3764_v50 = vld [vmem:[%s5983_s4 + $0x158] sm:$0x33] }
 0x382   :  { %v1729_v5 = vpop.f32.mrb[46].mxu1  ;;  %v4481_v58 = vld [vmem:[%s5983_s4 + $0x148] ss:$8 sps:$4 sm:$0xff]  }
 0x383   :  { %v1764_v36 = vmul.f32 0.25, %v1729_v5  ;;  %v1731_v59 = vpop.f32.mrb[47].mxu1  ;;  %v3776_v5 = vcombine.high %v3764_v50, %v3764_v50 }
 0x384   :  { %v4488_v59 = vld [vmem:[%s5983_s4 + $0x164] ss:$8 sps:$4 sm:$0xff]  }
 0x385   :  { %v5521_v51 = vpack.c.bf16 %v1764_v36, %v1763_v31  ;;  %v3775_v31 = vcombine.low %v3764_v50, %v3764_v50 }
 0x387   :  { %v1812_v46 = vrot.slane %v5521_v51, 4  ;;  %v2391_v36 = vsel %vm1889_vm3, %v3775_v31, 0 }
 0x389   :  { %v5525_v47 = vsel %vm117_vm0, %v1810_v16, %v1812_v46  ;;  %v4474_v16 = vld [vmem:[%s5983_s4 + $0x11c] ss:$8 sps:$4 sm:$0xff]  }
 0x38a   :  { %3704 = vmatmul.mubr.msk.bf16.gmra.mrb[68].mxu1 %vm1873_vm4, %v5525_v47 }
 0x38b   :  { %1958 = vmatprep.mubr.bf16.mxu1 %v4708_v1 }
 0x390   :  { %v1734_v52 = vpop.f32.mrb[48].mxu1 }
 0x391   :  { %v1736_v6 = vpop.f32.mrb[49].mxu1  ;;  %v1765_v7 = vmul.f32 0.25, %v1734_v52  ;;  %v4491_v52 = vld [vmem:[%s5983_s4 + $0x174] ss:$8 sps:$4 sm:$0xff]  }
 0x392   :  { %v1737_v60 = vpop.f32.mrb[50].mxu1  ;;  %v4489_v6 = vld [vmem:[%s5983_s4 + $0x170] ss:$8 sps:$4 sm:$0xff]  }
 0x393   :  { %v1766_v48 = vmul.f32 0.25, %v1737_v60  ;;  %v1739_v22 = vpop.f32.mrb[51].mxu1  ;;  %v4494_v60 = vld [vmem:[%s5983_s4 + $0x184] ss:$8 sps:$4 sm:$0xff]  }
 0x394   :  { %v4500_v22 = vld [vmem:[%s5983_s4 + $0x1a4] ss:$8 sps:$4 sm:$0xff]  }
 0x395   :  { %v5530_v8 = vpack.c.bf16 %v1766_v48, %v1765_v7  ;;  %v4492_v7 = vld [vmem:[%s5983_s4 + $0x180] ss:$8 sps:$4 sm:$0xff]   ;;  %v4495_v48 = vld [vmem:[%s5983_s4 + $0x190] ss:$8 sps:$4 sm:$0xff]  }
 0x397   :  { %v1814_v28 = vrot.slane %v5530_v8, 4 }
 0x399   :  { %v5534_v41 = vsel %vm117_vm0, %v1812_v46, %v1814_v28  ;;  %v4486_v46 = vld [vmem:[%s5983_s4 + $0x160] ss:$8 sps:$4 sm:$0xff]  }
 0x39a   :  { %3705 = vmatmul.mubr.msk.bf16.gmra.mrb[72].mxu1 %vm1873_vm4, %v5534_v41 }
 0x39b   :  { %1968 = vmatprep.mubr.bf16.mxu1 %v4708_v1 }
 0x3a0   :  { %v1742_v9 = vpop.f32.mrb[52].mxu1 }
 0x3a1   :  { %v1744_v32 = vpop.f32.mrb[53].mxu1  ;;  %v1767_v34 = vmul.f32 0.25, %v1742_v9 }
 0x3a2   :  { %v1745_v19 = vpop.f32.mrb[54].mxu1 }
 0x3a3   :  { %v1768_v61 = vmul.f32 0.25, %v1745_v19  ;;  %v1747_v29 = vpop.f32.mrb[55].mxu1 }
 0x3a4   :  { %v4509_v29 = vld [vmem:[%s5984_s6 + $0x30] sm:$0xff]  }
 0x3a5   :  { %v5539_v62 = vpack.c.bf16 %v1768_v61, %v1767_v34  ;;  %v4504_v34 = vld [vmem:[%s5984_s6 + $0x8] sm:$0xff]   ;;  %v4505_v61 = vld [vmem:[%s5984_s6 + $0x10] sm:$0xff]  }
 0x3a7   :  { %v1816_v38 = vrot.slane %v5539_v62, 4 }
 0x3a9   :  { %v5543_v63 = vsel %vm117_vm0, %v1814_v28, %v1816_v38  ;;  %v3793_v28 = vld [vmem:[%s5983_s4 + $0x1b0] sm:$0x33] }
 0x3aa   :  { %3706 = vmatmul.mubr.msk.bf16.gmra.mrb[76].mxu1 %vm1873_vm4, %v5543_v63  ;;  %v3805_v9 = vcombine.high %v3793_v28, %v3793_v28  ;;  %v3804_v32 = vcombine.low %v3793_v28, %v3793_v28  ;;  %v4513_v28 = vld [vmem:[%s5985_s7 + $0x28] sm:$0xff]  }
 0x3ab   :  { %2087 = vmatprep.mubr.bf16.mxu1 %v4708_v1 }
 0x3ac   :  { %v2570_v19 = vsel %vm1889_vm3, %v3804_v32, 0 }
 0x3b0   :  { %v1750_v37 = vpop.f32.mrb[56].mxu1 }
 0x3b1   :  { %v1752_v0 = vpop.f32.mrb[57].mxu1  ;;  %v1769_v33 = vmul.f32 0.25, %v1750_v37  ;;  %v2678_v37 = vld [vmem:[%s5986_s5] sm:$0x3] }
 0x3b2   :  { %v1753_v11 = vpop.f32.mrb[58].mxu1  ;;  %3720 = vmatmul.mubr.msk.bf16.vlgmr.msra.gmra.mrb[60].mxu1 %vm1873_vm4, %v5468_v53  ;;  %v4458_v53 = vld [vmem:[%s5983_s4 + $0xd0] ss:$8 sps:$4 sm:$0xff]   ;;  %v5765_v0 = vrot.slane %v2678_v37, %v1400_v23 }
 0x3b3   :  { %v1770_v12 = vmul.f32 0.25, %v1753_v11  ;;  %v1755_v25 = vpop.f32.mrb[59].mxu1  ;;  %2215 = vmatpush1.bf16.msra.mxu1 %v4452_v54  ;;  %2097 = vmatprep.mubr.bf16.mxu1 %v4708_v1  ;;  %v4709_v54 = vmov 0.0  }
 0x3b4   :  { %2216 = vmatprep.subr.bf16.mxu1 %v4457_v10  ;;  %v5761_v10 = vrot.slane %v2678_v37, %v1396_v21 }
 0x3b5   :  { %v5563_v56 = vpack.c.bf16 %v1770_v12, %v1769_v33 }
 0x3b7   :  { %v2330_v13 = vrot.slane %v5563_v56, 4  ;;  %2217 = vmatpush1.bf16.msra.mxu1 %v4455_v30 }
 0x3b8   :  { %2218 = vmatprep.subr.bf16.mxu1 %v4460_v35 }
 0x3b9   :  { %v5573_v40 = vsel %vm117_vm0, %v1816_v38, %v2330_v13  ;;  %v4511_v38 = vld [vmem:[%s5984_s6 + $0x40] sm:$0xff]  }
 0x3ba   :  { %3721 = vmatmul.mubr.msk.bf16.gmra.mrb[64].mxu1 %vm1873_vm4, %v5470_v55 }
 0x3bb   :  { %2107 = vmatprep.mubr.bf16.mxu1 %v4708_v1  ;;  %2219 = vmatpush1.bf16.msra.mxu1 %v4458_v53 }
 0x3bc   :  { %2220 = vmatprep.subr.bf16.mxu1 %v4463_v39 }
 0x3bf   :  { %2221 = vmatpush1.bf16.msra.mxu1 %v4461_v42 }
 0x3c0   :  { %2222 = vmatprep.subr.bf16.mxu1 %v4466_v43 }
 0x3c2   :  { %3722 = vmatmul.mubr.msk.bf16.gmra.mrb[68].mxu1 %vm1873_vm4, %v5501_v17 }
 0x3c3   :  { %2117 = vmatprep.mubr.bf16.mxu1 %v4708_v1  ;;  %2223 = vmatpush1.bf16.msra.mxu1 %v4464_v2 }
 0x3c4   :  { %3748 = vmatprep.subr.msk.bf16.mxu1 %vm1889_vm3, %v3747_v45 }
 0x3c7   :  { %2225 = vmatpush1.bf16.msra.mxu1 %v2209_v3 }
 0x3c8   :  { %2396 = vmatprep.subr.bf16.mxu1 %v4471_v15 }
 0x3ca   :  { %3723 = vmatmul.mubr.msk.bf16.gmra.mrb[72].mxu1 %vm1873_vm4, %v5521_v51 }
 0x3cb   :  { %2127 = vmatprep.mubr.bf16.mxu1 %v4708_v1 }
 0x3d2   :  { %3724 = vmatmul.mubr.msk.bf16.gmra.mrb[76].mxu1 %vm1873_vm4, %v5530_v8 }
 0x3d3   :  { %2246 = vmatprep.mubr.bf16.mxu1 %v4708_v1 }
 0x3da   :  { %3749 = vmatmul.mubr.msk.bf16.vlgmr.msra.gmra.mrb[60].mxu1 %vm1873_vm4, %v5470_v55  ;;  %v4480_v55 = vld [vmem:[%s5983_s4 + $0x13c] ss:$8 sps:$4 sm:$0xff]  }
 0x3db   :  { %2397 = vmatpush1.bf16.msra.mxu1 %v4469_v49  ;;  %2256 = vmatprep.mubr.bf16.mxu1 %v4708_v1 }
 0x3dc   :  { %2398 = vmatprep.subr.bf16.mxu1 %v4474_v16 }
 0x3df   :  { %2399 = vmatpush1.bf16.msra.mxu1 %v4472_v18 }
 0x3e0   :  { %2400 = vmatprep.subr.bf16.mxu1 %v4477_v4 }
 0x3e2   :  { %3750 = vmatmul.mubr.msk.bf16.gmra.mrb[64].mxu1 %vm1873_vm4, %v5501_v17 }
 0x3e3   :  { %2266 = vmatprep.mubr.bf16.mxu1 %v4708_v1  ;;  %2401 = vmatpush1.bf16.msra.mxu1 %v4475_v26 }
 0x3e4   :  { %2402 = vmatprep.subr.bf16.mxu1 %v4480_v55 }
 0x3e7   :  { %2403 = vmatpush1.bf16.msra.mxu1 %v4478_v57 }
 0x3e8   :  { %2404 = vmatprep.subr.bf16.mxu1 %v4483_v27 }
 0x3ea   :  { %3751 = vmatmul.mubr.msk.bf16.gmra.mrb[68].mxu1 %vm1873_vm4, %v5521_v51 }
 0x3eb   :  { %2276 = vmatprep.mubr.bf16.mxu1 %v4708_v1  ;;  %2405 = vmatpush1.bf16.msra.mxu1 %v4481_v58 }
 0x3ec   :  { %3777 = vmatprep.subr.msk.bf16.mxu1 %vm1889_vm3, %v3776_v5 }
 0x3ef   :  { %2407 = vmatpush1.bf16.msra.mxu1 %v2391_v36 }
 0x3f0   :  { %2575 = vmatprep.subr.bf16.mxu1 %v4488_v59 }
 0x3f2   :  { %3752 = vmatmul.mubr.msk.bf16.gmra.mrb[72].mxu1 %vm1873_vm4, %v5530_v8 }
 0x3f3   :  { %2286 = vmatprep.mubr.bf16.mxu1 %v4708_v1 }
 0x3fa   :  { %3753 = vmatmul.mubr.msk.bf16.gmra.mrb[76].mxu1 %vm1873_vm4, %v5539_v62 }
 0x3fb   :  { %2428 = vmatprep.mubr.bf16.mxu1 %v4708_v1 }
 0x402   :  { %3778 = vmatmul.mubr.msk.bf16.vlgmr.msra.gmra.mrb[60].mxu1 %vm1873_vm4, %v5511_v24  ;;  %v4497_v24 = vld [vmem:[%s5983_s4 + $0x194] ss:$8 sps:$4 sm:$0xff]  }
 0x403   :  { %2576 = vmatpush1.bf16.msra.mxu1 %v4486_v46  ;;  %2438 = vmatprep.mubr.bf16.mxu1 %v4708_v1 }
 0x404   :  { %2577 = vmatprep.subr.bf16.mxu1 %v4491_v52 }
 0x407   :  { %2578 = vmatpush1.bf16.msra.mxu1 %v4489_v6 }
 0x408   :  { %2579 = vmatprep.subr.bf16.mxu1 %v4494_v60 }
 0x40a   :  { %3779 = vmatmul.mubr.msk.bf16.gmra.mrb[64].mxu1 %vm1873_vm4, %v5525_v47  ;;  %v4498_v47 = vld [vmem:[%s5983_s4 + $0x1a0] ss:$8 sps:$4 sm:$0xff]  }
 0x40b   :  { %2448 = vmatprep.mubr.bf16.mxu1 %v4708_v1  ;;  %2580 = vmatpush1.bf16.msra.mxu1 %v4492_v7 }
 0x40c   :  { %2581 = vmatprep.subr.bf16.mxu1 %v4497_v24 }
 0x40f   :  { %2582 = vmatpush1.bf16.msra.mxu1 %v4495_v48 }
 0x410   :  { %2583 = vmatprep.subr.bf16.mxu1 %v4500_v22 }
 0x412   :  { %3780 = vmatmul.mubr.msk.bf16.gmra.mrb[68].mxu1 %vm1873_vm4, %v5534_v41  ;;  %v4503_v41 = vld [vmem:[%s5984_s6] sm:$0xff]  }
 0x413   :  { %2458 = vmatprep.mubr.bf16.mxu1 %v4708_v1  ;;  %2584 = vmatpush1.bf16.msra.mxu1 %v4498_v47 }
 0x414   :  { %3806 = vmatprep.subr.msk.bf16.mxu1 %vm1889_vm3, %v3805_v9 }
 0x417   :  { %2586 = vmatpush1.bf16.msra.mxu1 %v2570_v19 }
 0x418   :  { %2835 = vmatprep.subr.bf16.mxu1 %v4708_v1 }
 0x41a   :  { %3781 = vmatmul.mubr.msk.bf16.gmra.mrb[72].mxu1 %vm1873_vm4, %v5543_v63  ;;  %v4512_v63 = vld [vmem:[%s5984_s6 + $0x48] sm:$0xff]  }
 0x41b   :  { %2468 = vmatprep.mubr.bf16.mxu1 %v4708_v1 }
 0x422   :  { %3782 = vmatmul.mubr.msk.bf16.gmra.mrb[76].mxu1 %vm1873_vm4, %v5573_v40 }
 0x423   :  { %2607 = vmatprep.mubr.bf16.mxu1 %v4708_v1 }
 0x42a   :  { %3807 = vmatmul.mubr.msk.bf16.vlgmr.msra.gmra.mrb[60].mxu1 %vm1873_vm4, %v5501_v17  ;;  %v4506_v17 = vld [vmem:[%s5984_s6 + $0x18] sm:$0xff]  }
 0x42b   :  { %2617 = vmatprep.mubr.bf16.mxu1 %v4708_v1  ;;  %2836 = vmatpush1.bf16.msra.mxu1 %v4503_v41  ;;  %v4514_v41 = vld [vmem:[%s5985_s7 + $0x30] sm:$0xff]  }
 0x42c   :  { %2837 = vmatprep.subr.bf16.mxu1 %v4708_v1 }
 0x42f   :  { %2838 = vmatpush1.bf16.msra.mxu1 %v4504_v34 }
 0x430   :  { %2839 = vmatprep.subr.bf16.mxu1 %v4708_v1 }
 0x432   :  { %3808 = vmatmul.mubr.msk.bf16.gmra.mrb[64].mxu1 %vm1873_vm4, %v5521_v51  ;;  %v4507_v51 = vld [vmem:[%s5984_s6 + $0x20] sm:$0xff]  }
 0x433   :  { %2627 = vmatprep.mubr.bf16.mxu1 %v4708_v1  ;;  %2840 = vmatpush1.bf16.msra.mxu1 %v4505_v61 }
 0x434   :  { %2841 = vmatprep.subr.bf16.mxu1 %v4708_v1 }
 0x437   :  { %2842 = vmatpush1.bf16.msra.mxu1 %v4506_v17 }
 0x438   :  { %2843 = vmatprep.subr.bf16.mxu1 %v4708_v1 }
 0x43a   :  { %3809 = vmatmul.mubr.msk.bf16.gmra.mrb[68].mxu1 %vm1873_vm4, %v5530_v8  ;;  %v4508_v8 = vld [vmem:[%s5984_s6 + $0x28] sm:$0xff]  }
 0x43b   :  { %2637 = vmatprep.mubr.bf16.mxu1 %v4708_v1  ;;  %2844 = vmatpush1.bf16.msra.mxu1 %v4507_v51 }
 0x43c   :  { %2845 = vmatprep.subr.bf16.mxu1 %v4708_v1 }
 0x43f   :  { %2846 = vmatpush1.bf16.msra.mxu1 %v4508_v8 }
 0x440   :  { %2847 = vmatprep.subr.bf16.mxu1 %v4708_v1 }
 0x442   :  { %3810 = vmatmul.mubr.msk.bf16.gmra.mrb[72].mxu1 %vm1873_vm4, %v5539_v62  ;;  %v4510_v62 = vld [vmem:[%s5984_s6 + $0x38] sm:$0xff]  }
 0x443   :  { %2647 = vmatprep.mubr.bf16.mxu1 %v4708_v1  ;;  %2848 = vmatpush1.bf16.msra.mxu1 %v4509_v29 }
 0x444   :  { %2849 = vmatprep.subr.bf16.mxu1 %v4708_v1 }
 0x447   :  { %2850 = vmatpush1.bf16.msra.mxu1 %v4510_v62 }
 0x448   :  { %2851 = vmatprep.subr.bf16.mxu1 %v4708_v1 }
 0x44a   :  { %3811 = vmatmul.mubr.msk.bf16.gmra.mrb[76].mxu1 %vm1873_vm4, %v5563_v56 }
 0x44b   :  { %2852 = vmatpush1.bf16.msra.mxu1 %v4511_v38 }
 0x44c   :  { %2853 = vmatprep.subr.bf16.mxu1 %v4708_v1 }
 0x44f   :  { %2854 = vmatpush1.bf16.msra.mxu1 %v4512_v63 }
 0x450   :  { %3960 = vmatprep.subr.bf16.mxu1 %v4709_v54 }
 0x4fd   :  { %v2609_v1 = vpop.f32.mrb[60].mxu1 }
 0x4fe   :  { %v2690_v11 = vadd.f32 %v5761_v10, %v2609_v1  ;;  %v2611_v33 = vpop.f32.mrb[61].mxu1  ;;  %v4515_v1 = vld [vmem:[%s5985_s7 + $0x38] sm:$0xff]  }
 0x4ff   :  { %v2691_v12 = vadd.f32 %v5765_v0, %v2611_v33  ;;  %v2613_v25 = vpop.f32.mrb[62].mxu1 }
 0x500   :  { %4664 = vtanh.f32 %v2690_v11  ;;  %v2692_v30 = vadd.f32 %v5761_v10, %v2613_v25  ;;  %v2615_v35 = vpop.f32.mrb[63].mxu1 }
 0x501   :  { %4666 = vtanh.f32 %v2691_v12  ;;  %v2693_v56 = vadd.f32 %v5765_v0, %v2615_v35 }
 0x502   :  { %4668 = vtanh.f32 %v2692_v30 }
 0x503   :  { %4670 = vtanh.f32 %v2693_v56 }
 0x505   :  { %v2619_v21 = vpop.f32.mrb[64].mxu1 }
 0x506   :  { %v2694_v20 = vadd.f32 %v5761_v10, %v2619_v21  ;;  %v2621_v23 = vpop.f32.mrb[65].mxu1 }
 0x507   :  { %v2695_v13 = vadd.f32 %v5765_v0, %v2621_v23  ;;  %v2623_v53 = vpop.f32.mrb[66].mxu1 }
 0x508   :  { %4672 = vtanh.f32 %v2694_v20  ;;  %v2696_v39 = vadd.f32 %v5761_v10, %v2623_v53  ;;  %v2625_v40 = vpop.f32.mrb[67].mxu1 }
 0x509   :  { %4674 = vtanh.f32 %v2695_v13  ;;  %v2697_v42 = vadd.f32 %v5765_v0, %v2625_v40 }
 0x50a   :  { %v4665_v43 = vpop.eup %4664  ;;  %4676 = vtanh.f32 %v2696_v39 }
 0x50b   :  { %v4667_v44 = vpop.eup %4666  ;;  %4678 = vtanh.f32 %v2697_v42 }
 0x50c   :  { %v4669_v2 = vpop.eup %4668 }
 0x50d   :  { %v4671_v45 = vpop.eup %4670  ;;  %v2730_v14 = vadd.f32 %v4669_v2, %v4665_v43  ;;  %v2629_v3 = vpop.f32.mrb[68].mxu1  ;;  %v4516_v43 = vld [vmem:[%s5985_s7 + $0x40] sm:$0xff]  }
 0x50e   :  { %v2698_v15 = vadd.f32 %v5761_v10, %v2629_v3  ;;  %v2631_v49 = vpop.f32.mrb[69].mxu1  ;;  %v2731_v16 = vadd.f32 %v4671_v45, %v4667_v44  ;;  %v4517_v44 = vld [vmem:[%s5985_s7 + $0x48] sm:$0xff]  }
 0x50f   :  { %v2699_v18 = vadd.f32 %v5765_v0, %v2631_v49  ;;  %v2633_v4 = vpop.f32.mrb[70].mxu1 }
 0x510   :  { %4680 = vtanh.f32 %v2698_v15  ;;  %v2700_v26 = vadd.f32 %v5761_v10, %v2633_v4  ;;  %v2635_v55 = vpop.f32.mrb[71].mxu1 }
 0x511   :  { %4682 = vtanh.f32 %v2699_v18  ;;  %v2701_v57 = vadd.f32 %v5765_v0, %v2635_v55  ;;  %v4518_v18 = vld [vmem:[%s5985_s7] sm:$0xff]   ;;  %v4520_v55 = vld [vmem:[%s5985_s7 + $0x10] sm:$0xff]  }
 0x512   :  { %v4673_v27 = vpop.eup %4672  ;;  %4684 = vtanh.f32 %v2700_v26  ;;  %v4519_v26 = vld [vmem:[%s5985_s7 + $0x8] sm:$0xff]  }
 0x513   :  { %v4675_v50 = vpop.eup %4674  ;;  %4686 = vtanh.f32 %v2701_v57 }
 0x514   :  { %v4677_v58 = vpop.eup %4676 }
 0x515   :  { %v4679_v5 = vpop.eup %4678  ;;  %v2732_v31 = vadd.f32 %v4677_v58, %v4673_v27  ;;  %v2639_v36 = vpop.f32.mrb[72].mxu1  ;;  %v4521_v58 = vld [vmem:[%s5985_s7 + $0x18] sm:$0xff]  }
 0x516   :  { %v2702_v59 = vadd.f32 %v5761_v10, %v2639_v36  ;;  %v2641_v46 = vpop.f32.mrb[73].mxu1  ;;  %v2733_v52 = vadd.f32 %v4679_v5, %v4675_v50 }
 0x517   :  { %v2703_v6 = vadd.f32 %v5765_v0, %v2641_v46  ;;  %v2643_v60 = vpop.f32.mrb[74].mxu1  ;;  %v2740_v7 = vpack.c.bf16 %v2732_v31, %v2730_v14  ;;  %v4522_v46 = vld [vmem:[%s5985_s7 + $0x20] sm:$0xff]  }
 0x518   :  { %4688 = vtanh.f32 %v2702_v59  ;;  %v2704_v24 = vadd.f32 %v5761_v10, %v2643_v60  ;;  %v2645_v48 = vpop.f32.mrb[75].mxu1  ;;  %v2741_v22 = vpack.c.bf16 %v2733_v52, %v2731_v16 }
 0x519   :  { %4690 = vtanh.f32 %v2703_v6  ;;  %v2705_v47 = vadd.f32 %v5765_v0, %v2645_v48  ;;  %v4524_v48 = vld [vmem:[%s5985_s7 + $0x58] sm:$0xff]  }
 0x51a   :  { %v4681_v9 = vpop.eup %4680  ;;  %4692 = vtanh.f32 %v2704_v24  ;;  %3822 = vmatprep.mubr.msk.bf16.mxu1 %vm167_vm1, %v2741_v22  ;;  %v4525_v22 = vld [vmem:[%s5985_s7 + $0x60] sm:$0xff]  }
 0x51b   :  { %v4683_v32 = vpop.eup %4682  ;;  %4694 = vtanh.f32 %v2705_v47  ;;  %2868 = vmatmul.mubr.bf16.vlgmr.msra.gmra.mrb[80].mxu1 %v2740_v7  ;;  %v4523_v7 = vld [vmem:[%s5985_s7 + $0x50] sm:$0xff]  }
 0x51c   :  { %v4685_v19 = vpop.eup %4684  ;;  %3961 = vmatpush3.bf16.msra.mxu1 %v4513_v28  ;;  %v4526_v28 = vld [vmem:[%s5985_s7 + $0x68] sm:$0xff]   ;;  %v4527_v47 = vld [vmem:[%s5985_s7 + $0x70] sm:$0xff]  }
 0x51d   :  { %v4687_v34 = vpop.eup %4686  ;;  %v2649_v61 = vpop.f32.mrb[76].mxu1  ;;  %v2734_v17 = vadd.f32 %v4685_v19, %v4681_v9  ;;  %3962 = vmatprep.subr.bf16.mxu1 %v4709_v54  ;;  %v4528_v9 = vld [vmem:[%s5985_s7 + $0x78] sm:$0xff]   ;;  %v4530_v19 = vld [vmem:[%s5985_s7 + $0x88] sm:$0xff]  }
 0x51e   :  { %v2706_v51 = vadd.f32 %v5761_v10, %v2649_v61  ;;  %v2651_v8 = vpop.f32.mrb[77].mxu1  ;;  %v2735_v29 = vadd.f32 %v4687_v34, %v4683_v32  ;;  %v4529_v32 = vld [vmem:[%s5985_s7 + $0x80] sm:$0xff]   ;;  %v4532_v34 = vld [vmem:[%s5985_s7 + $0x98] sm:$0xff]  }
 0x51f   :  { %v2707_v62 = vadd.f32 %v5765_v0, %v2651_v8  ;;  %v2653_v38 = vpop.f32.mrb[78].mxu1  ;;  %v4533_v61 = vld [vmem:[%s5985_s7 + $0xa0] sm:$0xff]   ;;  %v4535_v8 = vld [vmem:[%s5985_s7 + $0xb0] sm:$0xff]  }
 0x520   :  { %4696 = vtanh.f32 %v2706_v51  ;;  %v2708_v63 = vadd.f32 %v5761_v10, %v2653_v38  ;;  %v2655_v37 = vpop.f32.mrb[79].mxu1  ;;  %3963 = vmatpush3.bf16.msra.mxu1 %v4514_v41  ;;  %v4531_v41 = vld [vmem:[%s5985_s7 + $0x90] sm:$0xff]   ;;  %v4534_v51 = vld [vmem:[%s5985_s7 + $0xa8] sm:$0xff]  }
 0x521   :  { %4698 = vtanh.f32 %v2707_v62  ;;  %v2709_v11 = vadd.f32 %v5765_v0, %v2655_v37  ;;  %3964 = vmatprep.subr.bf16.mxu1 %v4709_v54  ;;  %v4537_v62 = vld [vmem:[%s5985_s7 + $0xc0] sm:$0xff]  }
 0x522   :  { %v4689_v33 = vpop.eup %4688  ;;  %4700 = vtanh.f32 %v2708_v63  ;;  %v4538_v37 = vld [vmem:[%s5987_s9] sm:$0xff]  }
 0x523   :  { %v4691_v12 = vpop.eup %4690  ;;  %4702 = vtanh.f32 %v2709_v11  ;;  %v4540_v11 = vld [vmem:[%s5987_s9 + $0x10] sm:$0xff]  }
 0x524   :  { %v4693_v25 = vpop.eup %4692  ;;  %3965 = vmatpush3.bf16.msra.mxu1 %v4515_v1  ;;  %v4539_v1 = vld [vmem:[%s5987_s9 + $0x8] sm:$0xff]  }
 0x525   :  { %v4695_v30 = vpop.eup %4694  ;;  %v2736_v35 = vadd.f32 %v4693_v25, %v4689_v33  ;;  %3966 = vmatprep.subr.bf16.mxu1 %v4709_v54  ;;  %v4541_v33 = vld [vmem:[%s5987_s9 + $0x18] sm:$0xff]   ;;  %v4543_v25 = vld [vmem:[%s5987_s9 + $0x28] sm:$0xff]  }
 0x526   :  { %v2737_v10 = vadd.f32 %v4695_v30, %v4691_v12  ;;  %v4542_v12 = vld [vmem:[%s5987_s9 + $0x20] sm:$0xff]   ;;  %v4544_v30 = vld [vmem:[%s5987_s9 + $0x30] sm:$0xff]  }
 0x527   :  { %v2742_v56 = vpack.c.bf16 %v2736_v35, %v2734_v17  ;;  %v4545_v35 = vld [vmem:[%s5987_s9 + $0x38] ss:$0 sps:$4 sm:$0xff]  }
 0x528   :  { %v2743_v21 = vpack.c.bf16 %v2737_v10, %v2735_v29  ;;  %3967 = vmatpush3.bf16.msra.mxu1 %v4516_v43  ;;  %v4536_v29 = vld [vmem:[%s5985_s7 + $0xb8] sm:$0xff]   ;;  %v3408_v10 = vsel %vm117_vm0, %v4545_v35, 0 }
 0x529   :  { %3968 = vmatprep.subr.bf16.mxu1 %v4709_v54 }
 0x52a   :  { %v4697_v20 = vpop.eup %4696  ;;  %3823 = vmatprep.mubr.msk.bf16.mxu1 %vm167_vm1, %v2743_v21 }
 0x52b   :  { %v4699_v23 = vpop.eup %4698  ;;  %2876 = vmatmul.mubr.bf16.gmra.mrb[84].mxu1 %v2742_v56 }
 0x52c   :  { %v4701_v0 = vpop.eup %4700  ;;  %3969 = vmatpush3.bf16.msra.mxu1 %v4517_v44 }
 0x52d   :  { %v4703_v13 = vpop.eup %4702  ;;  %v2738_v53 = vadd.f32 %v4701_v0, %v4697_v20  ;;  %3974 = vmatprep.subr.bf16.mxu1 %v4709_v54 }
 0x52e   :  { %v2739_v39 = vadd.f32 %v4703_v13, %v4699_v23 }
 0x52f   :  { %v2744_v42 = vpack.c.bf16 %v2738_v53, %v2738_v53 }
 0x530   :  { %v2745_v40 = vpack.c.bf16 %v2739_v39, %v2739_v39 }
 0x532   :  { %3824 = vmatprep.mubr.msk.bf16.mxu1 %vm167_vm1, %v2745_v40 }
 0x533   :  { %2884 = vmatmul.mubr.bf16.gmra.mrb[88].mxu1 %v2744_v42 }
 0x534   :  { %3970 = vmatprep.mubr.msk.bf16.mxu1 %vm4710_vm5, %v4709_v54 }
 0x5ee   :  { %v2869_v2 = vpop.f32.mrb[80].mxu1 }
 0x5ef   :  { %v2871_v45 = vpop.f32.mrb[81].mxu1  ;;  %v2891_v3 = vmul.f32 0.25, %v2869_v2 }
 0x5f0   :  { %v2872_v14 = vpop.f32.mrb[82].mxu1 }
 0x5f1   :  { %v2892_v15 = vmul.f32 0.25, %v2872_v14  ;;  %v2874_v49 = vpop.f32.mrb[83].mxu1 }
 0x5f3   :  { %v2896_v16 = vpack.c.bf16 %v2892_v15, %v2891_v3 }
 0x5f5   :  { %v2921_v4 = vrot.slane %v2896_v16, 4 }
 0x5f7   :  { %3971 = vmatmul.mubr.msk.bf16.vlgmr.msra.gmra.mrb[92].mxu1 %vm2952_vm6, %v2921_v4  ;;  %v3895_v4 = vld [vmem:[%s5989_s8] ss:$0 sm:$0xff] }
 0x5f8   :  { %3975 = vmatpush3.bf16.msra.mxu1 %v4518_v18  ;;  %3984 = vmatprep.mubr.msk.bf16.mxu1 %vm4710_vm5, %v4709_v54 }
 0x5f9   :  { %3976 = vmatprep.subr.bf16.mxu1 %v4709_v54 }
 0x5fc   :  { %3977 = vmatpush3.bf16.msra.mxu1 %v4519_v26 }
 0x5fd   :  { %3978 = vmatprep.subr.bf16.mxu1 %v4709_v54 }
 0x5fe   :  { %v2877_v57 = vpop.f32.mrb[84].mxu1 }
 0x5ff   :  { %v2879_v27 = vpop.f32.mrb[85].mxu1  ;;  %v2893_v5 = vmul.f32 0.25, %v2877_v57 }
 0x600   :  { %3979 = vmatpush3.bf16.msra.mxu1 %v4520_v55  ;;  %v2880_v50 = vpop.f32.mrb[86].mxu1 }
 0x601   :  { %v2894_v31 = vmul.f32 0.25, %v2880_v50  ;;  %v2882_v36 = vpop.f32.mrb[87].mxu1  ;;  %3980 = vmatprep.subr.bf16.mxu1 %v4709_v54 }
 0x602   :  { %v4547_v36 = vld [vmem:[%s5988_s11 + $0x8] sm:$0xff]  }
 0x603   :  { %v2897_v59 = vpack.c.bf16 %v2894_v31, %v2893_v5  ;;  %v4546_v5 = vld [vmem:[%s5988_s11] sm:$0xff]  }
 0x604   :  { %3981 = vmatpush3.bf16.msra.mxu1 %v4521_v58 }
 0x605   :  { %3982 = vmatprep.subr.bf16.mxu1 %v4709_v54  ;;  %v3166_v17 = vrot.slane %v2897_v59, 4 }
 0x606   :  { %v2885_v52 = vpop.f32.mrb[88].mxu1 }
 0x607   :  { %v2887_v6 = vpop.f32.mrb[89].mxu1  ;;  %v2895_v38 = vmul.f32 0.25, %v2885_v52  ;;  %v4550_v52 = vld [vmem:[%s5988_s11 + $0x20] sm:$0xff]  }
 0x608   :  { %3983 = vmatpush3.bf16.msra.mxu1 %v4522_v46  ;;  %v2888_v60 = vpop.f32.mrb[90].mxu1  ;;  %v4549_v46 = vld [vmem:[%s5988_s11 + $0x18] sm:$0xff]   ;;  %v4551_v6 = vld [vmem:[%s5988_s11 + $0x28] ss:$0 sps:$4 sm:$0x33]  }
 0x609   :  { %v2889_v24 = vpop.f32.mrb[91].mxu1  ;;  %3988 = vmatprep.subr.bf16.mxu1 %v4709_v54  ;;  %v2898_v63 = vpack.c.bf16 %v2895_v38, %v2895_v38  ;;  %v3507_v60 = vsel %vm1889_vm3, %v4551_v6, 0 }
 0x60b   :  { %3985 = vmatmul.mubr.msk.bf16.vlgmr.msra.gmra.mrb[96].mxu1 %vm2952_vm6, %v2896_v16 }
 0x60c   :  { %3989 = vmatpush3.bf16.msra.mxu1 %v4523_v7  ;;  %3998 = vmatprep.mubr.msk.bf16.mxu1 %vm4710_vm5, %v4709_v54  ;;  %v3896_v7 = vld [vmem:[%s5990_s10] ss:$0 sm:$0xff] }
 0x60d   :  { %3990 = vmatprep.subr.bf16.mxu1 %v4709_v54 }
 0x610   :  { %3991 = vmatpush3.bf16.msra.mxu1 %v4524_v48 }
 0x611   :  { %3992 = vmatprep.subr.bf16.mxu1 %v4709_v54 }
 0x614   :  { %3993 = vmatpush3.bf16.msra.mxu1 %v4525_v22 }
 0x615   :  { %3994 = vmatprep.subr.bf16.mxu1 %v4709_v54 }
 0x618   :  { %3995 = vmatpush3.bf16.msra.mxu1 %v4526_v28 }
 0x619   :  { %3996 = vmatprep.subr.bf16.mxu1 %v4709_v54 }
 0x61c   :  { %3997 = vmatpush3.bf16.msra.mxu1 %v4527_v47 }
 0x61d   :  { %4002 = vmatprep.subr.bf16.mxu1 %v4709_v54 }
 0x61f   :  { %3999 = vmatmul.mubr.msk.bf16.vlgmr.msra.gmra.mrb[100].mxu1 %vm2952_vm6, %v2897_v59  ;;  %v4548_v59 = vld [vmem:[%s5988_s11 + $0x10] sm:$0xff]  }
 0x620   :  { %4003 = vmatpush3.bf16.msra.mxu1 %v4528_v9  ;;  %4012 = vmatprep.mubr.msk.bf16.mxu1 %vm4710_vm5, %v4709_v54 }
 0x621   :  { %4004 = vmatprep.subr.bf16.mxu1 %v4709_v54 }
 0x624   :  { %4005 = vmatpush3.bf16.msra.mxu1 %v4529_v32 }
 0x625   :  { %4006 = vmatprep.subr.bf16.mxu1 %v4709_v54 }
 0x628   :  { %4007 = vmatpush3.bf16.msra.mxu1 %v4530_v19 }
 0x629   :  { %4008 = vmatprep.subr.bf16.mxu1 %v4709_v54 }
 0x62c   :  { %4009 = vmatpush3.bf16.msra.mxu1 %v4531_v41 }
 0x62d   :  { %4010 = vmatprep.subr.bf16.mxu1 %v4709_v54 }
 0x630   :  { %4011 = vmatpush3.bf16.msra.mxu1 %v4532_v34 }
 0x631   :  { %4016 = vmatprep.subr.bf16.mxu1 %v4709_v54 }
 0x633   :  { %4013 = vmatmul.mubr.msk.bf16.vlgmr.msra.gmra.mrb[104].mxu1 %vm2952_vm6, %v3166_v17 }
 0x634   :  { %4017 = vmatpush3.bf16.msra.mxu1 %v4533_v61  ;;  %4026 = vmatprep.mubr.msk.bf16.mxu1 %vm4710_vm5, %v4709_v54 }
 0x635   :  { %4018 = vmatprep.subr.bf16.mxu1 %v4709_v54 }
 0x638   :  { %4019 = vmatpush3.bf16.msra.mxu1 %v4534_v51 }
 0x639   :  { %4020 = vmatprep.subr.bf16.mxu1 %v4709_v54 }
 0x63c   :  { %4021 = vmatpush3.bf16.msra.mxu1 %v4535_v8 }
 0x63d   :  { %4022 = vmatprep.subr.bf16.mxu1 %v4709_v54 }
 0x640   :  { %4023 = vmatpush3.bf16.msra.mxu1 %v4536_v29 }
 0x641   :  { %4024 = vmatprep.subr.bf16.mxu1 %v4709_v54 }
 0x644   :  { %4025 = vmatpush3.bf16.msra.mxu1 %v4537_v62 }
 0x645   :  { %4030 = vmatprep.subr.bf16.mxu1 %v4709_v54 }
 0x647   :  { %4027 = vmatmul.mubr.msk.bf16.vlgmr.msra.gmra.mrb[108].mxu1 %vm2952_vm6, %v2898_v63 }
 0x648   :  { %4046 = vmatprep.mubr.msk.bf16.mxu1 %vm4710_vm5, %v4709_v54  ;;  %4031 = vmatpush3.bf16.msra.mxu1 %v4538_v37 }
 0x649   :  { %4032 = vmatprep.subr.bf16.mxu1 %v4709_v54 }
 0x64c   :  { %4033 = vmatpush3.bf16.msra.mxu1 %v4539_v1 }
 0x64d   :  { %4034 = vmatprep.subr.bf16.mxu1 %v4709_v54 }
 0x650   :  { %4035 = vmatpush3.bf16.msra.mxu1 %v4540_v11 }
 0x651   :  { %4036 = vmatprep.subr.bf16.mxu1 %v4709_v54 }
 0x654   :  { %4037 = vmatpush3.bf16.msra.mxu1 %v4541_v33 }
 0x655   :  { %4038 = vmatprep.subr.bf16.mxu1 %v4709_v54 }
 0x658   :  { %4039 = vmatpush3.bf16.msra.mxu1 %v4542_v12 }
 0x659   :  { %4040 = vmatprep.subr.bf16.mxu1 %v4709_v54 }
 0x65c   :  { %4041 = vmatpush3.bf16.msra.mxu1 %v4543_v25 }
 0x65d   :  { %4042 = vmatprep.subr.bf16.mxu1 %v4709_v54 }
 0x660   :  { %4043 = vmatpush3.bf16.msra.mxu1 %v4544_v30 }
 0x661   :  { %4044 = vmatprep.subr.bf16.mxu1 %v4709_v54 }
 0x664   :  { %4045 = vmatpush3.bf16.msra.mxu1 %v3408_v10 }
 0x665   :  { %4050 = vmatprep.subr.bf16.mxu1 %v4709_v54 }
 0x6ca   :  { %v2990_v56 = vpop.f32.mrb[92].mxu1 }
 0x6cb   :  { %v3972_v21 = vpop.f32.mrb[93].mxu1 }
 0x6cc   :  { %v2993_v20 = vpop.f32.mrb[94].mxu1 }
 0x6cd   :  { %v3973_v23 = vpop.f32.mrb[95].mxu1 }
 0x6de   :  { %v3063_v0 = vpop.f32.mrb[96].mxu1 }
 0x6df   :  { %v3064_v13 = vadd.f32 %v3063_v0, %v2990_v56  ;;  %v3986_v53 = vpop.f32.mrb[97].mxu1 }
 0x6e0   :  { %v3066_v39 = vpop.f32.mrb[98].mxu1 }
 0x6e1   :  { %v3987_v40 = vpop.f32.mrb[99].mxu1 }
 0x6f2   :  { %v3147_v42 = vpop.f32.mrb[100].mxu1 }
 0x6f3   :  { %v3153_v43 = vadd.f32 %v3147_v42, %v3064_v13  ;;  %v4000_v44 = vpop.f32.mrb[101].mxu1 }
 0x6f4   :  { %v3150_v2 = vpop.f32.mrb[102].mxu1 }
 0x6f5   :  { %v4001_v45 = vpop.f32.mrb[103].mxu1 }
 0x706   :  { %v3234_v14 = vpop.f32.mrb[104].mxu1 }
 0x707   :  { %v3240_v3 = vadd.f32 %v3234_v14, %v3153_v43  ;;  %v4014_v15 = vpop.f32.mrb[105].mxu1 }
 0x708   :  { %v3237_v49 = vpop.f32.mrb[106].mxu1 }
 0x709   :  { %v4015_v16 = vpop.f32.mrb[107].mxu1 }
 0x71a   :  { %v3319_v18 = vpop.f32.mrb[108].mxu1 }
 0x71b   :  { %v3325_v26 = vadd.f32 %v3319_v18, %v3240_v3  ;;  %v4028_v55 = vpop.f32.mrb[109].mxu1 }
 0x71c   :  { %v3322_v57 = vpop.f32.mrb[110].mxu1 }
 0x71d   :  { %v3333_v27 = vadd.f32 %v3895_v4, %v3325_v26  ;;  %v4029_v50 = vpop.f32.mrb[111].mxu1 }
 0x71f   :  { %4704 = vtanh.f32 %v3333_v27 }
 0x729   :  { %v4705_v58 = vpop.eup %4704 }
 0x72a   :  { %v3335_v31 = vpack.c.bf16 %v4705_v58, %v4705_v58 }
 0x72c   :  { %4047 = vmatmul.mubr.msk.bf16.vlgmr.msra.gmra.mrb[112].mxu1 %vm3403_vm7, %v3335_v31 }
 0x72d   :  { %4051 = vmatpush3.bf16.msra.mxu1 %v4546_v5  ;;  %4062 = vmatprep.mubr.msk.bf16.mxu1 %vm4710_vm5, %v4709_v54 }
 0x72e   :  { %4052 = vmatprep.subr.bf16.mxu1 %v4709_v54 }
 0x731   :  { %4053 = vmatpush3.bf16.msra.mxu1 %v4547_v36 }
 0x732   :  { %4054 = vmatprep.subr.bf16.mxu1 %v4709_v54 }
 0x735   :  { %4055 = vmatpush3.bf16.msra.mxu1 %v4548_v59 }
 0x736   :  { %4056 = vmatprep.subr.bf16.mxu1 %v4709_v54 }
 0x739   :  { %4057 = vmatpush3.bf16.msra.mxu1 %v4549_v46 }
 0x73a   :  { %4058 = vmatprep.subr.bf16.mxu1 %v4709_v54 }
 0x73d   :  { %4059 = vmatpush3.bf16.msra.mxu1 %v4550_v52 }
 0x73e   :  { %4060 = vmatprep.subr.bf16.mxu1 %v4709_v54  ;;  %v3906_v54 = vld [vmem:[%s5991_s12] ss:$0 sm:$0xff] }
 0x741   :  { %4061 = vmatpush3.bf16.msra.mxu1 %v3507_v60 }
 0x7ff   :  { %v3444_v24 = vpop.f32.mrb[112].mxu1 }
 0x800   :  { %v3445_v48 = vadd.f32 %v3896_v7, %v3444_v24  ;;  %v4048_v22 = vpop.f32.mrb[113].mxu1 }
 0x801   :  { %v3447_v28 = vpop.f32.mrb[114].mxu1 }
 0x802   :  { %4706 = vtanh.f32 %v3445_v48  ;;  %v4049_v47 = vpop.f32.mrb[115].mxu1 }
 0x80c   :  { %v4707_v9 = vpop.eup %4706 }
 0x80d   :  { %v3451_v32 = vpack.c.bf16 %v4707_v9, %v4707_v9 }
 0x80f   :  { %4063 = vmatmul.mubr.msk.bf16.vlgmr.msra.gmra.mrb[116].mxu1 %vm1873_vm4, %v3451_v32 }
 0x8e2   :  { %v3543_v19 = vpop.f32.mrb[116].mxu1 }
 0x8e3   :  { %v3544_v41 = vadd.f32 %v3906_v54, %v3543_v19  ;;  %v4064_v34 = vpop.f32.mrb[117].mxu1 }
 0x8e4   :  { %v3546_v61 = vpop.f32.mrb[118].mxu1 }
 0x8e5   :  { %3549 = vst [vmem:[%s5992_s13] sm:$0xff] %v3544_v41  ;;  %v4065_v17 = vpop.f32.mrb[119].mxu1 }

</bundles_post_ra>
